<compile_context>
chip_gen: v6e
topology: v6e:2x2x1
jax: 0.10.0
libtpu: 0.0.40
codegen_flags: <defaults>
</compile_context>

<pallas_src>
import jax
import jax.numpy as jnp
from jax import lax
from jax.experimental import pallas as pl
from jax.experimental.pallas import tpu as pltpu

# ----------------------------- config -----------------------------
B = 2              # batch
C_IN = 4           # image channels
HW = 16            # spatial size (height = width)
K = 3              # conv kernel size (stride 1, pad 1)
C_OUT = 8          # cnn feature dim
T = 8              # caption (sequence) length
V = 20             # vocab size
E = 16             # embedding dim
H = 32             # rnn hidden dim
FEAT = C_OUT + H   # concat feature dim (small stand-in for 1256)
CLASS_NUM = 10
N_PAD = 128        # lane-dense padded classifier width
P = HW * HW        # spatial positions per image (256)
BP = B * P         # flattened batch*spatial (512)
LOG2_HW = HW.bit_length() - 1    # 4
LOG2_P = P.bit_length() - 1      # 8

VMEM_SPEC = pl.BlockSpec(memory_space=pltpu.MemorySpace.VMEM)
SMEM_SPEC = pl.BlockSpec(memory_space=pltpu.MemorySpace.SMEM)


# --------------------------- fused Pallas kernel ---------------------------
def fused_kernel(x_ref, conv_w_ref, conv_b_ref, caps_ref, proj_ref, whh_ref,
                 lens_ref, fc_ref, out_ref, xw_scratch):
    # x:      (C_IN, B*P) f32 VMEM      image, channel-major, row-major flat spatial
    # conv_w: (K*K, C_OUT, C_IN) f32    conv_b: (C_OUT, 1) f32
    # caps:   (B*T,) int32 SMEM         proj:   (V, H) f32  == emb @ W_ih + b_h
    # whh:    (H, H) f32                lens:   (B,) int32 SMEM
    # fc:     (FEAT+1, N_PAD) f32  rows [0:C_OUT]=img W, [C_OUT:FEAT]=rnn W, [FEAT]=bias
    # out:    (B, N_PAD) f32            xw_scratch: (T*B, H) f32 VMEM scratch

    # ------------- CNN branch: lane-dense conv built from shifted views -------------
    x = x_ref[...]                                              # (4, 512)
    pos = lax.broadcasted_iota(jnp.int32, (1, BP), 1)           # global flat index
    col = pos & (HW - 1)                                        # j within row
    row = (pos >> LOG2_HW) & (HW - 1)                           # i within image

    acc = jnp.zeros((C_OUT, BP), jnp.float32)
    s = 0
    for di in (-1, 0, 1):
        for dj in (-1, 0, 1):
            off = di * HW + dj
            xs = x if off == 0 else pltpu.roll(x, shift=(-off) % BP, axis=1)
            cond = None                                         # zero-padding mask
            if di == -1:
                cond = row >= 1
            elif di == 1:
                cond = row <= HW - 2
            if dj == -1:
                c2 = col >= 1
                cond = c2 if cond is None else (cond & c2)
            elif dj == 1:
                c2 = col <= HW - 2
                cond = c2 if cond is None else (cond & c2)
            if cond is not None:
                xs = jnp.where(cond, xs, 0.0)
            acc = acc + jnp.dot(conv_w_ref[s], xs,              # (8,4)x(4,512)
                                preferred_element_type=jnp.float32)
            s += 1

    y = jnp.maximum(acc + conv_b_ref[...], 0.0)                 # ReLU on (8, 512)

    # global mean pool per image: trans_b dot against an in-kernel pool matrix
    bidx = lax.broadcasted_iota(jnp.int32, (B, BP), 0)
    pidx = lax.broadcasted_iota(jnp.int32, (B, BP), 1)
    pool = jnp.where((pidx >> LOG2_P) == bidx, 1.0 / P, 0.0)    # (B, B*P)
    img_feat = lax.dot_general(pool, y, (((1,), (1,)), ((), ())),
                               preferred_element_type=jnp.float32)   # (B, C_OUT)

    # ------------------------------ RNN branch ------------------------------
    # real gather of projected-embedding rows (x_t @ W_ih + b_h pre-folded)
    for t in range(T):
        for b in range(B):
            cid = caps_ref[b * T + t]                           # SMEM scalar id
            xw_scratch[pl.ds(t * B + b, 1), :] = proj_ref[pl.ds(cid, 1), :]

    # length-select masks built once, off the serial recurrence chain
    hrow = lax.broadcasted_iota(jnp.int32, (B, H), 0)
    lens_full = jnp.zeros((B, H), jnp.int32)
    for b in range(B):
        lens_full = jnp.where(hrow == b, lens_ref[b], lens_full)
    masks = [lens_full == (t + 1) for t in range(T)]

    whh = whh_ref[...]
    h = jnp.zeros((B, H), jnp.float32)
    sent = jnp.zeros((B, H), jnp.float32)
    for t in range(T):                 # fully unrolled; overlaps with CNN branch
        x_proj = xw_scratch[pl.ds(t * B, B), :]                 # (B, H)
        h = jnp.tanh(x_proj + jnp.dot(h, whh,
                                      preferred_element_type=jnp.float32))
        sent = jnp.where(masks[t], h, sent)                     # hidden at cap_len

    # --------- classifier: Linear(concat(img, sent)) as split matmuls + Sigmoid ---------
    logits = (jnp.dot(img_feat, fc_ref[pl.ds(0, C_OUT), :],
                      preferred_element_type=jnp.float32)
              + jnp.dot(sent, fc_ref[pl.ds(C_OUT, H), :],
                        preferred_element_type=jnp.float32)
              + fc_ref[pl.ds(FEAT, 1), :])
    out_ref[...] = pl.reciprocal(1.0 + jnp.exp(-logits), approx=True)


# ------------------------------- glue -------------------------------
def prepare_params(p):
    """One-time parameter prep (kernel layouts); NOT on the per-call path."""
    # conv weight OIHW -> (K*K, C_OUT, C_IN), slot s = (di+1)*K + (dj+1)
    conv_w_k = jnp.transpose(p["conv_w"], (2, 3, 0, 1)).reshape(K * K, C_OUT, C_IN)
    conv_b_k = p["conv_b"].reshape(C_OUT, 1)
    # fold input projection + bias into the embedding table (linear, exact)
    emb_proj = p["emb_table"] @ p["w_ih"] + p["b_h"]            # (V, H)
    # split+pad classifier: rows [0:C_OUT]=img, [C_OUT:FEAT]=rnn, [FEAT]=bias
    pad_n = N_PAD - CLASS_NUM
    fcw = jnp.pad(p["fc_w"], ((0, 0), (0, pad_n)))              # (FEAT, N_PAD)
    fcb = jnp.pad(p["fc_b"].reshape(1, CLASS_NUM), ((0, 0), (0, pad_n)))
    fc_pack = jnp.concatenate([fcw, fcb], axis=0)               # (FEAT+1, N_PAD)
    return {"conv_w_k": conv_w_k, "conv_b_k": conv_b_k, "emb_proj": emb_proj,
            "w_hh": p["w_hh"], "fc_pack": fc_pack}


def multi_mode_forward(image, captions, cap_lens, kp):
    b = image.shape[0]
    # per-call prep kept minimal: one tiny transpose/reshape + int flattens
    x_flat = jnp.transpose(image, (1, 0, 2, 3)).reshape(C_IN, b * P)
    caps_flat = captions.reshape(b * T).astype(jnp.int32)       # id(b,t) at b*T+t
    lens_flat = cap_lens.reshape(b).astype(jnp.int32)

    out_padded = pl.pallas_call(
        fused_kernel,
        out_shape=jax.ShapeDtypeStruct((b, N_PAD), jnp.float32),
        in_specs=[VMEM_SPEC, VMEM_SPEC, VMEM_SPEC, SMEM_SPEC,
                  VMEM_SPEC, VMEM_SPEC, SMEM_SPEC, VMEM_SPEC],
        out_specs=VMEM_SPEC,
        scratch_shapes=[pltpu.VMEM((T * b, H), jnp.float32)],
        # TODO(synk): at real scale (feature_dim=1256, big vocab) add a batch
        # grid axis marked "parallel" (v7x has 2 TCs), cast matmul operands to
        # bf16 on v6e/v7x (keep f32 elementwise on v5e), and block the FC /
        # embedding tiles against v7x's 64 MiB VMEM (vmem_limit_bytes).
    )(x_flat, kp["conv_w_k"], kp["conv_b_k"], caps_flat, kp["emb_proj"],
      kp["w_hh"], lens_flat, kp["fc_pack"])

    return out_padded[:, :CLASS_NUM]


# --------------------------- pure-JAX reference ---------------------------
def reference_forward(image, captions, cap_lens, p):
    y = lax.conv_general_dilated(
        image, p["conv_w"], window_strides=(1, 1), padding="SAME",
        dimension_numbers=("NCHW", "OIHW", "NCHW"))
    y = jnp.maximum(y + p["conv_b"].reshape(1, C_OUT, 1, 1), 0.0)
    image_feature = jnp.mean(y, axis=(2, 3))                    # (B, C_OUT)

    emb = p["emb_table"][captions]                              # (B, T, E)
    h = jnp.zeros((image.shape[0], H), jnp.float32)
    sent = jnp.zeros((image.shape[0], H), jnp.float32)
    for t in range(T):
        h = jnp.tanh(emb[:, t, :] @ p["w_ih"] + h @ p["w_hh"] + p["b_h"])
        sent = jnp.where(cap_lens.reshape(-1, 1) == t + 1, h, sent)

    feat = jnp.concatenate([image_feature, sent], axis=1)
    logits = feat @ p["fc_w"] + p["fc_b"]
    return 1.0 / (1.0 + jnp.exp(-logits))


# -------------------------------- main --------------------------------
if __name__ == "__main__":
    key = jax.random.PRNGKey(0)
    ks = jax.random.split(key, 10)

    # inputs
    image = jax.random.normal(ks[0], (B, C_IN, HW, HW), jnp.float32)
    captions = jax.random.randint(ks[1], (B, T), 1, V).astype(jnp.int32)
    cap_lens = jnp.array([T, T - 3], jnp.int32)
    batch_size = B  # mirrors the PyTorch forward signature

    # deterministic synthetic parameters (canonical / PyTorch-like layouts)
    params = {
        "conv_w": 0.1 * jax.random.normal(ks[2], (C_OUT, C_IN, K, K), jnp.float32),
        "conv_b": 0.1 * jax.random.normal(ks[3], (C_OUT,), jnp.float32),
        "emb_table": 0.1 * jax.random.normal(ks[4], (V, E), jnp.float32),
        "w_ih": 0.1 * jax.random.normal(ks[5], (E, H), jnp.float32),
        "w_hh": 0.1 * jax.random.normal(ks[6], (H, H), jnp.float32),
        "b_h": 0.1 * jax.random.normal(ks[7], (1, H), jnp.float32),
        "fc_w": 0.1 * jax.random.normal(ks[8], (FEAT, CLASS_NUM), jnp.float32),
        "fc_b": 0.1 * jax.random.normal(ks[9], (1, CLASS_NUM), jnp.float32),
    }

    # one-time kernel-layout prep (off the forward path)
    kparams = prepare_params(params)

    fwd = jax.jit(multi_mode_forward)
    out = jax.block_until_ready(fwd(image, captions, cap_lens, kparams))

    ref = jax.block_until_ready(reference_forward(image, captions, cap_lens, params))

    assert out.shape == (batch_size, CLASS_NUM), out.shape
    assert bool(jnp.all(jnp.isfinite(out)))
    assert bool(jnp.allclose(out, ref, atol=1e-2, rtol=1e-2)), (
        f"max abs diff {float(jnp.max(jnp.abs(out - ref)))}")

    print("KERNEL_OK")
</pallas_src>

<mosaic_0001>
module attributes {stable_mosaic.version = 11 : i64} {
  func.func @fused_kernel(%arg0: memref<4x512xf32, #tpu.memory_space<vmem>>, %arg1: memref<9x8x4xf32, #tpu.memory_space<vmem>>, %arg2: memref<8x1xf32, #tpu.memory_space<vmem>>, %arg3: memref<16xi32, #tpu.memory_space<smem>>, %arg4: memref<20x32xf32, #tpu.memory_space<vmem>>, %arg5: memref<32x32xf32, #tpu.memory_space<vmem>>, %arg6: memref<2xi32, #tpu.memory_space<smem>>, %arg7: memref<41x128xf32, #tpu.memory_space<vmem>>, %arg8: memref<2x128xf32, #tpu.memory_space<vmem>>, %arg9: memref<16x32xf32, #tpu.memory_space<vmem>>) attributes {dimension_semantics = [], scalar_prefetch = 0 : i64, scratch_operands = 1 : i64, tpu.core_type = #tpu.core_type<tc>} {
    %c0 = arith.constant 0 : index
    %c0_0 = arith.constant 0 : index
    %0 = vector.load %arg0[%c0, %c0_0] : memref<4x512xf32, #tpu.memory_space<vmem>>, vector<4x512xf32>
    %1 = tpu.iota {dimensions = array<i32: 1>} : vector<1x512xi32>
    %c15_i32 = arith.constant 15 : i32
    %2 = vector.broadcast %c15_i32 : i32 to vector<1x512xi32>
    %3 = arith.andi %1, %2 : vector<1x512xi32>
    %c4_i32 = arith.constant 4 : i32
    %4 = vector.broadcast %c4_i32 : i32 to vector<1x512xi32>
    %5 = arith.shrsi %1, %4 : vector<1x512xi32>
    %c15_i32_1 = arith.constant 15 : i32
    %6 = vector.broadcast %c15_i32_1 : i32 to vector<1x512xi32>
    %7 = arith.andi %5, %6 : vector<1x512xi32>
    %cst = arith.constant 0.000000e+00 : f32
    %8 = vector.broadcast %cst : f32 to vector<8x512xf32>
    %c17_i32 = arith.constant 17 : i32
    %9 = tpu.dynamic_rotate %0 by %c17_i32 dim 1 : vector<4x512xf32>, i32 -> vector<4x512xf32>
    %c1_i32 = arith.constant 1 : i32
    %10 = vector.broadcast %c1_i32 : i32 to vector<1x512xi32>
    %11 = arith.cmpi sge, %7, %10 : vector<1x512xi32>
    %c1_i32_2 = arith.constant 1 : i32
    %12 = vector.broadcast %c1_i32_2 : i32 to vector<1x512xi32>
    %13 = arith.cmpi sge, %3, %12 : vector<1x512xi32>
    %14 = arith.andi %11, %13 : vector<1x512xi1>
    %cst_3 = arith.constant 0.000000e+00 : f32
    %15 = vector.shape_cast %14 : vector<1x512xi1> to vector<1x512xi1>
    %16 = vector.broadcast %15 : vector<1x512xi1> to vector<4x512xi1>
    %17 = vector.broadcast %cst_3 : f32 to vector<4x512xf32>
    %18 = arith.select %16, %9, %17 : vector<4x512xi1>, vector<4x512xf32>
    %c0_4 = arith.constant 0 : index
    %c0_5 = arith.constant 0 : index
    %c0_6 = arith.constant 0 : index
    %19 = vector.load %arg1[%c0_4, %c0_5, %c0_6] : memref<9x8x4xf32, #tpu.memory_space<vmem>>, vector<1x8x4xf32>
    %20 = vector.shape_cast %19 : vector<1x8x4xf32> to vector<8x4xf32>
    %cst_7 = arith.constant dense<0.000000e+00> : vector<8x512xf32>
    %21 = tpu.matmul %20, %18, %cst_7 {dimension_numbers = #tpu.dot_dimension_numbers<[1], [0], [0], [1], [0, 0, 1, 1], [], []>} : vector<8x4xf32>, vector<4x512xf32>, vector<8x512xf32> -> vector<8x512xf32>
    %22 = arith.addf %8, %21 : vector<8x512xf32>
    %c16_i32 = arith.constant 16 : i32
    %23 = tpu.dynamic_rotate %0 by %c16_i32 dim 1 : vector<4x512xf32>, i32 -> vector<4x512xf32>
    %c1_i32_8 = arith.constant 1 : i32
    %24 = vector.broadcast %c1_i32_8 : i32 to vector<1x512xi32>
    %25 = arith.cmpi sge, %7, %24 : vector<1x512xi32>
    %cst_9 = arith.constant 0.000000e+00 : f32
    %26 = vector.shape_cast %25 : vector<1x512xi1> to vector<1x512xi1>
    %27 = vector.broadcast %26 : vector<1x512xi1> to vector<4x512xi1>
    %28 = vector.broadcast %cst_9 : f32 to vector<4x512xf32>
    %29 = arith.select %27, %23, %28 : vector<4x512xi1>, vector<4x512xf32>
    %c1 = arith.constant 1 : index
    %c0_10 = arith.constant 0 : index
    %c0_11 = arith.constant 0 : index
    %30 = vector.load %arg1[%c1, %c0_10, %c0_11] : memref<9x8x4xf32, #tpu.memory_space<vmem>>, vector<1x8x4xf32>
    %31 = vector.shape_cast %30 : vector<1x8x4xf32> to vector<8x4xf32>
    %cst_12 = arith.constant dense<0.000000e+00> : vector<8x512xf32>
    %32 = tpu.matmul %31, %29, %cst_12 {dimension_numbers = #tpu.dot_dimension_numbers<[1], [0], [0], [1], [0, 0, 1, 1], [], []>} : vector<8x4xf32>, vector<4x512xf32>, vector<8x512xf32> -> vector<8x512xf32>
    %33 = arith.addf %22, %32 : vector<8x512xf32>
    %c15_i32_13 = arith.constant 15 : i32
    %34 = tpu.dynamic_rotate %0 by %c15_i32_13 dim 1 : vector<4x512xf32>, i32 -> vector<4x512xf32>
    %c1_i32_14 = arith.constant 1 : i32
    %35 = vector.broadcast %c1_i32_14 : i32 to vector<1x512xi32>
    %36 = arith.cmpi sge, %7, %35 : vector<1x512xi32>
    %c14_i32 = arith.constant 14 : i32
    %37 = vector.broadcast %c14_i32 : i32 to vector<1x512xi32>
    %38 = arith.cmpi sle, %3, %37 : vector<1x512xi32>
    %39 = arith.andi %36, %38 : vector<1x512xi1>
    %cst_15 = arith.constant 0.000000e+00 : f32
    %40 = vector.shape_cast %39 : vector<1x512xi1> to vector<1x512xi1>
    %41 = vector.broadcast %40 : vector<1x512xi1> to vector<4x512xi1>
    %42 = vector.broadcast %cst_15 : f32 to vector<4x512xf32>
    %43 = arith.select %41, %34, %42 : vector<4x512xi1>, vector<4x512xf32>
    %c2 = arith.constant 2 : index
    %c0_16 = arith.constant 0 : index
    %c0_17 = arith.constant 0 : index
    %44 = vector.load %arg1[%c2, %c0_16, %c0_17] : memref<9x8x4xf32, #tpu.memory_space<vmem>>, vector<1x8x4xf32>
    %45 = vector.shape_cast %44 : vector<1x8x4xf32> to vector<8x4xf32>
    %cst_18 = arith.constant dense<0.000000e+00> : vector<8x512xf32>
    %46 = tpu.matmul %45, %43, %cst_18 {dimension_numbers = #tpu.dot_dimension_numbers<[1], [0], [0], [1], [0, 0, 1, 1], [], []>} : vector<8x4xf32>, vector<4x512xf32>, vector<8x512xf32> -> vector<8x512xf32>
    %47 = arith.addf %33, %46 : vector<8x512xf32>
    %c1_i32_19 = arith.constant 1 : i32
    %48 = tpu.dynamic_rotate %0 by %c1_i32_19 dim 1 : vector<4x512xf32>, i32 -> vector<4x512xf32>
    %c1_i32_20 = arith.constant 1 : i32
    %49 = vector.broadcast %c1_i32_20 : i32 to vector<1x512xi32>
    %50 = arith.cmpi sge, %3, %49 : vector<1x512xi32>
    %cst_21 = arith.constant 0.000000e+00 : f32
    %51 = vector.shape_cast %50 : vector<1x512xi1> to vector<1x512xi1>
    %52 = vector.broadcast %51 : vector<1x512xi1> to vector<4x512xi1>
    %53 = vector.broadcast %cst_21 : f32 to vector<4x512xf32>
    %54 = arith.select %52, %48, %53 : vector<4x512xi1>, vector<4x512xf32>
    %c3 = arith.constant 3 : index
    %c0_22 = arith.constant 0 : index
    %c0_23 = arith.constant 0 : index
    %55 = vector.load %arg1[%c3, %c0_22, %c0_23] : memref<9x8x4xf32, #tpu.memory_space<vmem>>, vector<1x8x4xf32>
    %56 = vector.shape_cast %55 : vector<1x8x4xf32> to vector<8x4xf32>
    %cst_24 = arith.constant dense<0.000000e+00> : vector<8x512xf32>
    %57 = tpu.matmul %56, %54, %cst_24 {dimension_numbers = #tpu.dot_dimension_numbers<[1], [0], [0], [1], [0, 0, 1, 1], [], []>} : vector<8x4xf32>, vector<4x512xf32>, vector<8x512xf32> -> vector<8x512xf32>
    %58 = arith.addf %47, %57 : vector<8x512xf32>
    %c4 = arith.constant 4 : index
    %c0_25 = arith.constant 0 : index
    %c0_26 = arith.constant 0 : index
    %59 = vector.load %arg1[%c4, %c0_25, %c0_26] : memref<9x8x4xf32, #tpu.memory_space<vmem>>, vector<1x8x4xf32>
    %60 = vector.shape_cast %59 : vector<1x8x4xf32> to vector<8x4xf32>
    %cst_27 = arith.constant dense<0.000000e+00> : vector<8x512xf32>
    %61 = tpu.matmul %60, %0, %cst_27 {dimension_numbers = #tpu.dot_dimension_numbers<[1], [0], [0], [1], [0, 0, 1, 1], [], []>} : vector<8x4xf32>, vector<4x512xf32>, vector<8x512xf32> -> vector<8x512xf32>
    %62 = arith.addf %58, %61 : vector<8x512xf32>
    %c511_i32 = arith.constant 511 : i32
    %63 = tpu.dynamic_rotate %0 by %c511_i32 dim 1 : vector<4x512xf32>, i32 -> vector<4x512xf32>
    %c14_i32_28 = arith.constant 14 : i32
    %64 = vector.broadcast %c14_i32_28 : i32 to vector<1x512xi32>
    %65 = arith.cmpi sle, %3, %64 : vector<1x512xi32>
    %cst_29 = arith.constant 0.000000e+00 : f32
    %66 = vector.shape_cast %65 : vector<1x512xi1> to vector<1x512xi1>
    %67 = vector.broadcast %66 : vector<1x512xi1> to vector<4x512xi1>
    %68 = vector.broadcast %cst_29 : f32 to vector<4x512xf32>
    %69 = arith.select %67, %63, %68 : vector<4x512xi1>, vector<4x512xf32>
    %c5 = arith.constant 5 : index
    %c0_30 = arith.constant 0 : index
    %c0_31 = arith.constant 0 : index
    %70 = vector.load %arg1[%c5, %c0_30, %c0_31] : memref<9x8x4xf32, #tpu.memory_space<vmem>>, vector<1x8x4xf32>
    %71 = vector.shape_cast %70 : vector<1x8x4xf32> to vector<8x4xf32>
    %cst_32 = arith.constant dense<0.000000e+00> : vector<8x512xf32>
    %72 = tpu.matmul %71, %69, %cst_32 {dimension_numbers = #tpu.dot_dimension_numbers<[1], [0], [0], [1], [0, 0, 1, 1], [], []>} : vector<8x4xf32>, vector<4x512xf32>, vector<8x512xf32> -> vector<8x512xf32>
    %73 = arith.addf %62, %72 : vector<8x512xf32>
    %c497_i32 = arith.constant 497 : i32
    %74 = tpu.dynamic_rotate %0 by %c497_i32 dim 1 : vector<4x512xf32>, i32 -> vector<4x512xf32>
    %c14_i32_33 = arith.constant 14 : i32
    %75 = vector.broadcast %c14_i32_33 : i32 to vector<1x512xi32>
    %76 = arith.cmpi sle, %7, %75 : vector<1x512xi32>
    %c1_i32_34 = arith.constant 1 : i32
    %77 = vector.broadcast %c1_i32_34 : i32 to vector<1x512xi32>
    %78 = arith.cmpi sge, %3, %77 : vector<1x512xi32>
    %79 = arith.andi %76, %78 : vector<1x512xi1>
    %cst_35 = arith.constant 0.000000e+00 : f32
    %80 = vector.shape_cast %79 : vector<1x512xi1> to vector<1x512xi1>
    %81 = vector.broadcast %80 : vector<1x512xi1> to vector<4x512xi1>
    %82 = vector.broadcast %cst_35 : f32 to vector<4x512xf32>
    %83 = arith.select %81, %74, %82 : vector<4x512xi1>, vector<4x512xf32>
    %c6 = arith.constant 6 : index
    %c0_36 = arith.constant 0 : index
    %c0_37 = arith.constant 0 : index
    %84 = vector.load %arg1[%c6, %c0_36, %c0_37] : memref<9x8x4xf32, #tpu.memory_space<vmem>>, vector<1x8x4xf32>
    %85 = vector.shape_cast %84 : vector<1x8x4xf32> to vector<8x4xf32>
    %cst_38 = arith.constant dense<0.000000e+00> : vector<8x512xf32>
    %86 = tpu.matmul %85, %83, %cst_38 {dimension_numbers = #tpu.dot_dimension_numbers<[1], [0], [0], [1], [0, 0, 1, 1], [], []>} : vector<8x4xf32>, vector<4x512xf32>, vector<8x512xf32> -> vector<8x512xf32>
    %87 = arith.addf %73, %86 : vector<8x512xf32>
    %c496_i32 = arith.constant 496 : i32
    %88 = tpu.dynamic_rotate %0 by %c496_i32 dim 1 : vector<4x512xf32>, i32 -> vector<4x512xf32>
    %c14_i32_39 = arith.constant 14 : i32
    %89 = vector.broadcast %c14_i32_39 : i32 to vector<1x512xi32>
    %90 = arith.cmpi sle, %7, %89 : vector<1x512xi32>
    %cst_40 = arith.constant 0.000000e+00 : f32
    %91 = vector.shape_cast %90 : vector<1x512xi1> to vector<1x512xi1>
    %92 = vector.broadcast %91 : vector<1x512xi1> to vector<4x512xi1>
    %93 = vector.broadcast %cst_40 : f32 to vector<4x512xf32>
    %94 = arith.select %92, %88, %93 : vector<4x512xi1>, vector<4x512xf32>
    %c7 = arith.constant 7 : index
    %c0_41 = arith.constant 0 : index
    %c0_42 = arith.constant 0 : index
    %95 = vector.load %arg1[%c7, %c0_41, %c0_42] : memref<9x8x4xf32, #tpu.memory_space<vmem>>, vector<1x8x4xf32>
    %96 = vector.shape_cast %95 : vector<1x8x4xf32> to vector<8x4xf32>
    %cst_43 = arith.constant dense<0.000000e+00> : vector<8x512xf32>
    %97 = tpu.matmul %96, %94, %cst_43 {dimension_numbers = #tpu.dot_dimension_numbers<[1], [0], [0], [1], [0, 0, 1, 1], [], []>} : vector<8x4xf32>, vector<4x512xf32>, vector<8x512xf32> -> vector<8x512xf32>
    %98 = arith.addf %87, %97 : vector<8x512xf32>
    %c495_i32 = arith.constant 495 : i32
    %99 = tpu.dynamic_rotate %0 by %c495_i32 dim 1 : vector<4x512xf32>, i32 -> vector<4x512xf32>
    %c14_i32_44 = arith.constant 14 : i32
    %100 = vector.broadcast %c14_i32_44 : i32 to vector<1x512xi32>
    %101 = arith.cmpi sle, %7, %100 : vector<1x512xi32>
    %c14_i32_45 = arith.constant 14 : i32
    %102 = vector.broadcast %c14_i32_45 : i32 to vector<1x512xi32>
    %103 = arith.cmpi sle, %3, %102 : vector<1x512xi32>
    %104 = arith.andi %101, %103 : vector<1x512xi1>
    %cst_46 = arith.constant 0.000000e+00 : f32
    %105 = vector.shape_cast %104 : vector<1x512xi1> to vector<1x512xi1>
    %106 = vector.broadcast %105 : vector<1x512xi1> to vector<4x512xi1>
    %107 = vector.broadcast %cst_46 : f32 to vector<4x512xf32>
    %108 = arith.select %106, %99, %107 : vector<4x512xi1>, vector<4x512xf32>
    %c8 = arith.constant 8 : index
    %c0_47 = arith.constant 0 : index
    %c0_48 = arith.constant 0 : index
    %109 = vector.load %arg1[%c8, %c0_47, %c0_48] : memref<9x8x4xf32, #tpu.memory_space<vmem>>, vector<1x8x4xf32>
    %110 = vector.shape_cast %109 : vector<1x8x4xf32> to vector<8x4xf32>
    %cst_49 = arith.constant dense<0.000000e+00> : vector<8x512xf32>
    %111 = tpu.matmul %110, %108, %cst_49 {dimension_numbers = #tpu.dot_dimension_numbers<[1], [0], [0], [1], [0, 0, 1, 1], [], []>} : vector<8x4xf32>, vector<4x512xf32>, vector<8x512xf32> -> vector<8x512xf32>
    %112 = arith.addf %98, %111 : vector<8x512xf32>
    %c0_50 = arith.constant 0 : index
    %c0_51 = arith.constant 0 : index
    %113 = vector.load %arg2[%c0_50, %c0_51] : memref<8x1xf32, #tpu.memory_space<vmem>>, vector<8x1xf32>
    %114 = vector.broadcast %113 : vector<8x1xf32> to vector<8x512xf32>
    %115 = arith.addf %112, %114 : vector<8x512xf32>
    %cst_52 = arith.constant 0.000000e+00 : f32
    %116 = vector.broadcast %cst_52 : f32 to vector<8x512xf32>
    %117 = arith.maximumf %115, %116 : vector<8x512xf32>
    %118 = tpu.iota {dimensions = array<i32: 0>} : vector<2x512xi32>
    %119 = tpu.iota {dimensions = array<i32: 1>} : vector<2x512xi32>
    %c8_i32 = arith.constant 8 : i32
    %120 = vector.broadcast %c8_i32 : i32 to vector<2x512xi32>
    %121 = arith.shrsi %119, %120 : vector<2x512xi32>
    %122 = arith.cmpi eq, %121, %118 : vector<2x512xi32>
    %cst_53 = arith.constant 3.906250e-03 : f32
    %cst_54 = arith.constant 0.000000e+00 : f32
    %123 = vector.broadcast %cst_53 : f32 to vector<2x512xf32>
    %124 = vector.broadcast %cst_54 : f32 to vector<2x512xf32>
    %125 = arith.select %122, %123, %124 : vector<2x512xi1>, vector<2x512xf32>
    %cst_55 = arith.constant dense<0.000000e+00> : vector<2x8xf32>
    %126 = tpu.matmul %125, %117, %cst_55 {dimension_numbers = #tpu.dot_dimension_numbers<[1], [1], [0], [0], [0, 0, 1, 0], [], []>} : vector<2x512xf32>, vector<8x512xf32>, vector<2x8xf32> -> vector<2x8xf32>
    %c0_56 = arith.constant 0 : index
    %127 = memref.load %arg3[%c0_56] : memref<16xi32, #tpu.memory_space<smem>>
    %128 = arith.index_cast %127 : i32 to index
    %c0_57 = arith.constant 0 : index
    %129 = vector.load %arg4[%128, %c0_57] : memref<20x32xf32, #tpu.memory_space<vmem>>, vector<1x32xf32>
    %c0_58 = arith.constant 0 : index
    %c0_59 = arith.constant 0 : index
    %130 = vector.load %arg9[%c0_58, %c0_59] : memref<16x32xf32, #tpu.memory_space<vmem>>, vector<1x32xf32>
    tpu.vector_store %arg9[%c0_58, %c0_59], %129 {strides = array<i32>} : memref<16x32xf32, #tpu.memory_space<vmem>>, vector<1x32xf32>,
    %c8_60 = arith.constant 8 : index
    %131 = memref.load %arg3[%c8_60] : memref<16xi32, #tpu.memory_space<smem>>
    %132 = arith.index_cast %131 : i32 to index
    %c0_61 = arith.constant 0 : index
    %133 = vector.load %arg4[%132, %c0_61] : memref<20x32xf32, #tpu.memory_space<vmem>>, vector<1x32xf32>
    %c1_62 = arith.constant 1 : index
    %c0_63 = arith.constant 0 : index
    %134 = vector.load %arg9[%c1_62, %c0_63] : memref<16x32xf32, #tpu.memory_space<vmem>>, vector<1x32xf32>
    tpu.vector_store %arg9[%c1_62, %c0_63], %133 {strides = array<i32>} : memref<16x32xf32, #tpu.memory_space<vmem>>, vector<1x32xf32>,
    %c1_64 = arith.constant 1 : index
    %135 = memref.load %arg3[%c1_64] : memref<16xi32, #tpu.memory_space<smem>>
    %136 = arith.index_cast %135 : i32 to index
    %c0_65 = arith.constant 0 : index
    %137 = vector.load %arg4[%136, %c0_65] : memref<20x32xf32, #tpu.memory_space<vmem>>, vector<1x32xf32>
    %c2_66 = arith.constant 2 : index
    %c0_67 = arith.constant 0 : index
    %138 = vector.load %arg9[%c2_66, %c0_67] : memref<16x32xf32, #tpu.memory_space<vmem>>, vector<1x32xf32>
    tpu.vector_store %arg9[%c2_66, %c0_67], %137 {strides = array<i32>} : memref<16x32xf32, #tpu.memory_space<vmem>>, vector<1x32xf32>,
    %c9 = arith.constant 9 : index
    %139 = memref.load %arg3[%c9] : memref<16xi32, #tpu.memory_space<smem>>
    %140 = arith.index_cast %139 : i32 to index
    %c0_68 = arith.constant 0 : index
    %141 = vector.load %arg4[%140, %c0_68] : memref<20x32xf32, #tpu.memory_space<vmem>>, vector<1x32xf32>
    %c3_69 = arith.constant 3 : index
    %c0_70 = arith.constant 0 : index
    %142 = vector.load %arg9[%c3_69, %c0_70] : memref<16x32xf32, #tpu.memory_space<vmem>>, vector<1x32xf32>
    tpu.vector_store %arg9[%c3_69, %c0_70], %141 {strides = array<i32>} : memref<16x32xf32, #tpu.memory_space<vmem>>, vector<1x32xf32>,
    %c2_71 = arith.constant 2 : index
    %143 = memref.load %arg3[%c2_71] : memref<16xi32, #tpu.memory_space<smem>>
    %144 = arith.index_cast %143 : i32 to index
    %c0_72 = arith.constant 0 : index
    %145 = vector.load %arg4[%144, %c0_72] : memref<20x32xf32, #tpu.memory_space<vmem>>, vector<1x32xf32>
    %c4_73 = arith.constant 4 : index
    %c0_74 = arith.constant 0 : index
    %146 = vector.load %arg9[%c4_73, %c0_74] : memref<16x32xf32, #tpu.memory_space<vmem>>, vector<1x32xf32>
    tpu.vector_store %arg9[%c4_73, %c0_74], %145 {strides = array<i32>} : memref<16x32xf32, #tpu.memory_space<vmem>>, vector<1x32xf32>,
    %c10 = arith.constant 10 : index
    %147 = memref.load %arg3[%c10] : memref<16xi32, #tpu.memory_space<smem>>
    %148 = arith.index_cast %147 : i32 to index
    %c0_75 = arith.constant 0 : index
    %149 = vector.load %arg4[%148, %c0_75] : memref<20x32xf32, #tpu.memory_space<vmem>>, vector<1x32xf32>
    %c5_76 = arith.constant 5 : index
    %c0_77 = arith.constant 0 : index
    %150 = vector.load %arg9[%c5_76, %c0_77] : memref<16x32xf32, #tpu.memory_space<vmem>>, vector<1x32xf32>
    tpu.vector_store %arg9[%c5_76, %c0_77], %149 {strides = array<i32>} : memref<16x32xf32, #tpu.memory_space<vmem>>, vector<1x32xf32>,
    %c3_78 = arith.constant 3 : index
    %151 = memref.load %arg3[%c3_78] : memref<16xi32, #tpu.memory_space<smem>>
    %152 = arith.index_cast %151 : i32 to index
    %c0_79 = arith.constant 0 : index
    %153 = vector.load %arg4[%152, %c0_79] : memref<20x32xf32, #tpu.memory_space<vmem>>, vector<1x32xf32>
    %c6_80 = arith.constant 6 : index
    %c0_81 = arith.constant 0 : index
    %154 = vector.load %arg9[%c6_80, %c0_81] : memref<16x32xf32, #tpu.memory_space<vmem>>, vector<1x32xf32>
    tpu.vector_store %arg9[%c6_80, %c0_81], %153 {strides = array<i32>} : memref<16x32xf32, #tpu.memory_space<vmem>>, vector<1x32xf32>,
    %c11 = arith.constant 11 : index
    %155 = memref.load %arg3[%c11] : memref<16xi32, #tpu.memory_space<smem>>
    %156 = arith.index_cast %155 : i32 to index
    %c0_82 = arith.constant 0 : index
    %157 = vector.load %arg4[%156, %c0_82] : memref<20x32xf32, #tpu.memory_space<vmem>>, vector<1x32xf32>
    %c7_83 = arith.constant 7 : index
    %c0_84 = arith.constant 0 : index
    %158 = vector.load %arg9[%c7_83, %c0_84] : memref<16x32xf32, #tpu.memory_space<vmem>>, vector<1x32xf32>
    tpu.vector_store %arg9[%c7_83, %c0_84], %157 {strides = array<i32>} : memref<16x32xf32, #tpu.memory_space<vmem>>, vector<1x32xf32>,
    %c4_85 = arith.constant 4 : index
    %159 = memref.load %arg3[%c4_85] : memref<16xi32, #tpu.memory_space<smem>>
    %160 = arith.index_cast %159 : i32 to index
    %c0_86 = arith.constant 0 : index
    %161 = vector.load %arg4[%160, %c0_86] : memref<20x32xf32, #tpu.memory_space<vmem>>, vector<1x32xf32>
    %c8_87 = arith.constant 8 : index
    %c0_88 = arith.constant 0 : index
    %162 = vector.load %arg9[%c8_87, %c0_88] : memref<16x32xf32, #tpu.memory_space<vmem>>, vector<1x32xf32>
    tpu.vector_store %arg9[%c8_87, %c0_88], %161 {strides = array<i32>} : memref<16x32xf32, #tpu.memory_space<vmem>>, vector<1x32xf32>,
    %c12 = arith.constant 12 : index
    %163 = memref.load %arg3[%c12] : memref<16xi32, #tpu.memory_space<smem>>
    %164 = arith.index_cast %163 : i32 to index
    %c0_89 = arith.constant 0 : index
    %165 = vector.load %arg4[%164, %c0_89] : memref<20x32xf32, #tpu.memory_space<vmem>>, vector<1x32xf32>
    %c9_90 = arith.constant 9 : index
    %c0_91 = arith.constant 0 : index
    %166 = vector.load %arg9[%c9_90, %c0_91] : memref<16x32xf32, #tpu.memory_space<vmem>>, vector<1x32xf32>
    tpu.vector_store %arg9[%c9_90, %c0_91], %165 {strides = array<i32>} : memref<16x32xf32, #tpu.memory_space<vmem>>, vector<1x32xf32>,
    %c5_92 = arith.constant 5 : index
    %167 = memref.load %arg3[%c5_92] : memref<16xi32, #tpu.memory_space<smem>>
    %168 = arith.index_cast %167 : i32 to index
    %c0_93 = arith.constant 0 : index
    %169 = vector.load %arg4[%168, %c0_93] : memref<20x32xf32, #tpu.memory_space<vmem>>, vector<1x32xf32>
    %c10_94 = arith.constant 10 : index
    %c0_95 = arith.constant 0 : index
    %170 = vector.load %arg9[%c10_94, %c0_95] : memref<16x32xf32, #tpu.memory_space<vmem>>, vector<1x32xf32>
    tpu.vector_store %arg9[%c10_94, %c0_95], %169 {strides = array<i32>} : memref<16x32xf32, #tpu.memory_space<vmem>>, vector<1x32xf32>,
    %c13 = arith.constant 13 : index
    %171 = memref.load %arg3[%c13] : memref<16xi32, #tpu.memory_space<smem>>
    %172 = arith.index_cast %171 : i32 to index
    %c0_96 = arith.constant 0 : index
    %173 = vector.load %arg4[%172, %c0_96] : memref<20x32xf32, #tpu.memory_space<vmem>>, vector<1x32xf32>
    %c11_97 = arith.constant 11 : index
    %c0_98 = arith.constant 0 : index
    %174 = vector.load %arg9[%c11_97, %c0_98] : memref<16x32xf32, #tpu.memory_space<vmem>>, vector<1x32xf32>
    tpu.vector_store %arg9[%c11_97, %c0_98], %173 {strides = array<i32>} : memref<16x32xf32, #tpu.memory_space<vmem>>, vector<1x32xf32>,
    %c6_99 = arith.constant 6 : index
    %175 = memref.load %arg3[%c6_99] : memref<16xi32, #tpu.memory_space<smem>>
    %176 = arith.index_cast %175 : i32 to index
    %c0_100 = arith.constant 0 : index
    %177 = vector.load %arg4[%176, %c0_100] : memref<20x32xf32, #tpu.memory_space<vmem>>, vector<1x32xf32>
    %c12_101 = arith.constant 12 : index
    %c0_102 = arith.constant 0 : index
    %178 = vector.load %arg9[%c12_101, %c0_102] : memref<16x32xf32, #tpu.memory_space<vmem>>, vector<1x32xf32>
    tpu.vector_store %arg9[%c12_101, %c0_102], %177 {strides = array<i32>} : memref<16x32xf32, #tpu.memory_space<vmem>>, vector<1x32xf32>,
    %c14 = arith.constant 14 : index
    %179 = memref.load %arg3[%c14] : memref<16xi32, #tpu.memory_space<smem>>
    %180 = arith.index_cast %179 : i32 to index
    %c0_103 = arith.constant 0 : index
    %181 = vector.load %arg4[%180, %c0_103] : memref<20x32xf32, #tpu.memory_space<vmem>>, vector<1x32xf32>
    %c13_104 = arith.constant 13 : index
    %c0_105 = arith.constant 0 : index
    %182 = vector.load %arg9[%c13_104, %c0_105] : memref<16x32xf32, #tpu.memory_space<vmem>>, vector<1x32xf32>
    tpu.vector_store %arg9[%c13_104, %c0_105], %181 {strides = array<i32>} : memref<16x32xf32, #tpu.memory_space<vmem>>, vector<1x32xf32>,
    %c7_106 = arith.constant 7 : index
    %183 = memref.load %arg3[%c7_106] : memref<16xi32, #tpu.memory_space<smem>>
    %184 = arith.index_cast %183 : i32 to index
    %c0_107 = arith.constant 0 : index
    %185 = vector.load %arg4[%184, %c0_107] : memref<20x32xf32, #tpu.memory_space<vmem>>, vector<1x32xf32>
    %c14_108 = arith.constant 14 : index
    %c0_109 = arith.constant 0 : index
    %186 = vector.load %arg9[%c14_108, %c0_109] : memref<16x32xf32, #tpu.memory_space<vmem>>, vector<1x32xf32>
    tpu.vector_store %arg9[%c14_108, %c0_109], %185 {strides = array<i32>} : memref<16x32xf32, #tpu.memory_space<vmem>>, vector<1x32xf32>,
    %c15 = arith.constant 15 : index
    %187 = memref.load %arg3[%c15] : memref<16xi32, #tpu.memory_space<smem>>
    %188 = arith.index_cast %187 : i32 to index
    %c0_110 = arith.constant 0 : index
    %189 = vector.load %arg4[%188, %c0_110] : memref<20x32xf32, #tpu.memory_space<vmem>>, vector<1x32xf32>
    %c15_111 = arith.constant 15 : index
    %c0_112 = arith.constant 0 : index
    %190 = vector.load %arg9[%c15_111, %c0_112] : memref<16x32xf32, #tpu.memory_space<vmem>>, vector<1x32xf32>
    tpu.vector_store %arg9[%c15_111, %c0_112], %189 {strides = array<i32>} : memref<16x32xf32, #tpu.memory_space<vmem>>, vector<1x32xf32>,
    %191 = tpu.iota {dimensions = array<i32: 0>} : vector<2x32xi32>
    %c0_i32 = arith.constant 0 : i32
    %192 = vector.broadcast %c0_i32 : i32 to vector<2x32xi32>
    %c0_i32_113 = arith.constant 0 : i32
    %193 = vector.broadcast %c0_i32_113 : i32 to vector<2x32xi32>
    %194 = arith.cmpi eq, %191, %193 : vector<2x32xi32>
    %c0_114 = arith.constant 0 : index
    %195 = memref.load %arg6[%c0_114] : memref<2xi32, #tpu.memory_space<smem>>
    %196 = vector.broadcast %195 : i32 to vector<2x32xi32>
    %197 = arith.select %194, %196, %192 : vector<2x32xi1>, vector<2x32xi32>
    %c1_i32_115 = arith.constant 1 : i32
    %198 = vector.broadcast %c1_i32_115 : i32 to vector<2x32xi32>
    %199 = arith.cmpi eq, %191, %198 : vector<2x32xi32>
    %c1_116 = arith.constant 1 : index
    %200 = memref.load %arg6[%c1_116] : memref<2xi32, #tpu.memory_space<smem>>
    %201 = vector.broadcast %200 : i32 to vector<2x32xi32>
    %202 = arith.select %199, %201, %197 : vector<2x32xi1>, vector<2x32xi32>
    %c1_i32_117 = arith.constant 1 : i32
    %203 = vector.broadcast %c1_i32_117 : i32 to vector<2x32xi32>
    %204 = arith.cmpi eq, %202, %203 : vector<2x32xi32>
    %c2_i32 = arith.constant 2 : i32
    %205 = vector.broadcast %c2_i32 : i32 to vector<2x32xi32>
    %206 = arith.cmpi eq, %202, %205 : vector<2x32xi32>
    %c3_i32 = arith.constant 3 : i32
    %207 = vector.broadcast %c3_i32 : i32 to vector<2x32xi32>
    %208 = arith.cmpi eq, %202, %207 : vector<2x32xi32>
    %c4_i32_118 = arith.constant 4 : i32
    %209 = vector.broadcast %c4_i32_118 : i32 to vector<2x32xi32>
    %210 = arith.cmpi eq, %202, %209 : vector<2x32xi32>
    %c5_i32 = arith.constant 5 : i32
    %211 = vector.broadcast %c5_i32 : i32 to vector<2x32xi32>
    %212 = arith.cmpi eq, %202, %211 : vector<2x32xi32>
    %c6_i32 = arith.constant 6 : i32
    %213 = vector.broadcast %c6_i32 : i32 to vector<2x32xi32>
    %214 = arith.cmpi eq, %202, %213 : vector<2x32xi32>
    %c7_i32 = arith.constant 7 : i32
    %215 = vector.broadcast %c7_i32 : i32 to vector<2x32xi32>
    %216 = arith.cmpi eq, %202, %215 : vector<2x32xi32>
    %c8_i32_119 = arith.constant 8 : i32
    %217 = vector.broadcast %c8_i32_119 : i32 to vector<2x32xi32>
    %218 = arith.cmpi eq, %202, %217 : vector<2x32xi32>
    %c0_120 = arith.constant 0 : index
    %c0_121 = arith.constant 0 : index
    %219 = vector.load %arg5[%c0_120, %c0_121] : memref<32x32xf32, #tpu.memory_space<vmem>>, vector<32x32xf32>
    %cst_122 = arith.constant 0.000000e+00 : f32
    %220 = vector.broadcast %cst_122 : f32 to vector<2x32xf32>
    %cst_123 = arith.constant 0.000000e+00 : f32
    %221 = vector.broadcast %cst_123 : f32 to vector<2x32xf32>
    %c0_124 = arith.constant 0 : index
    %c0_125 = arith.constant 0 : index
    %222 = vector.load %arg9[%c0_124, %c0_125] : memref<16x32xf32, #tpu.memory_space<vmem>>, vector<2x32xf32>
    %cst_126 = arith.constant dense<0.000000e+00> : vector<2x32xf32>
    %223 = tpu.matmul %220, %219, %cst_126 {dimension_numbers = #tpu.dot_dimension_numbers<[1], [0], [0], [1], [0, 0, 1, 1], [], []>} : vector<2x32xf32>, vector<32x32xf32>, vector<2x32xf32> -> vector<2x32xf32>
    %224 = arith.addf %222, %223 : vector<2x32xf32>
    %225 = math.tanh %224 : vector<2x32xf32>
    %226 = arith.select %204, %225, %221 : vector<2x32xi1>, vector<2x32xf32>
    %c2_127 = arith.constant 2 : index
    %c0_128 = arith.constant 0 : index
    %227 = vector.load %arg9[%c2_127, %c0_128] : memref<16x32xf32, #tpu.memory_space<vmem>>, vector<2x32xf32>
    %cst_129 = arith.constant dense<0.000000e+00> : vector<2x32xf32>
    %228 = tpu.matmul %225, %219, %cst_129 {dimension_numbers = #tpu.dot_dimension_numbers<[1], [0], [0], [1], [0, 0, 1, 1], [], []>} : vector<2x32xf32>, vector<32x32xf32>, vector<2x32xf32> -> vector<2x32xf32>
    %229 = arith.addf %227, %228 : vector<2x32xf32>
    %230 = math.tanh %229 : vector<2x32xf32>
    %231 = arith.select %206, %230, %226 : vector<2x32xi1>, vector<2x32xf32>
    %c4_130 = arith.constant 4 : index
    %c0_131 = arith.constant 0 : index
    %232 = vector.load %arg9[%c4_130, %c0_131] : memref<16x32xf32, #tpu.memory_space<vmem>>, vector<2x32xf32>
    %cst_132 = arith.constant dense<0.000000e+00> : vector<2x32xf32>
    %233 = tpu.matmul %230, %219, %cst_132 {dimension_numbers = #tpu.dot_dimension_numbers<[1], [0], [0], [1], [0, 0, 1, 1], [], []>} : vector<2x32xf32>, vector<32x32xf32>, vector<2x32xf32> -> vector<2x32xf32>
    %234 = arith.addf %232, %233 : vector<2x32xf32>
    %235 = math.tanh %234 : vector<2x32xf32>
    %236 = arith.select %208, %235, %231 : vector<2x32xi1>, vector<2x32xf32>
    %c6_133 = arith.constant 6 : index
    %c0_134 = arith.constant 0 : index
    %237 = vector.load %arg9[%c6_133, %c0_134] : memref<16x32xf32, #tpu.memory_space<vmem>>, vector<2x32xf32>
    %cst_135 = arith.constant dense<0.000000e+00> : vector<2x32xf32>
    %238 = tpu.matmul %235, %219, %cst_135 {dimension_numbers = #tpu.dot_dimension_numbers<[1], [0], [0], [1], [0, 0, 1, 1], [], []>} : vector<2x32xf32>, vector<32x32xf32>, vector<2x32xf32> -> vector<2x32xf32>
    %239 = arith.addf %237, %238 : vector<2x32xf32>
    %240 = math.tanh %239 : vector<2x32xf32>
    %241 = arith.select %210, %240, %236 : vector<2x32xi1>, vector<2x32xf32>
    %c8_136 = arith.constant 8 : index
    %c0_137 = arith.constant 0 : index
    %242 = vector.load %arg9[%c8_136, %c0_137] : memref<16x32xf32, #tpu.memory_space<vmem>>, vector<2x32xf32>
    %cst_138 = arith.constant dense<0.000000e+00> : vector<2x32xf32>
    %243 = tpu.matmul %240, %219, %cst_138 {dimension_numbers = #tpu.dot_dimension_numbers<[1], [0], [0], [1], [0, 0, 1, 1], [], []>} : vector<2x32xf32>, vector<32x32xf32>, vector<2x32xf32> -> vector<2x32xf32>
    %244 = arith.addf %242, %243 : vector<2x32xf32>
    %245 = math.tanh %244 : vector<2x32xf32>
    %246 = arith.select %212, %245, %241 : vector<2x32xi1>, vector<2x32xf32>
    %c10_139 = arith.constant 10 : index
    %c0_140 = arith.constant 0 : index
    %247 = vector.load %arg9[%c10_139, %c0_140] : memref<16x32xf32, #tpu.memory_space<vmem>>, vector<2x32xf32>
    %cst_141 = arith.constant dense<0.000000e+00> : vector<2x32xf32>
    %248 = tpu.matmul %245, %219, %cst_141 {dimension_numbers = #tpu.dot_dimension_numbers<[1], [0], [0], [1], [0, 0, 1, 1], [], []>} : vector<2x32xf32>, vector<32x32xf32>, vector<2x32xf32> -> vector<2x32xf32>
    %249 = arith.addf %247, %248 : vector<2x32xf32>
    %250 = math.tanh %249 : vector<2x32xf32>
    %251 = arith.select %214, %250, %246 : vector<2x32xi1>, vector<2x32xf32>
    %c12_142 = arith.constant 12 : index
    %c0_143 = arith.constant 0 : index
    %252 = vector.load %arg9[%c12_142, %c0_143] : memref<16x32xf32, #tpu.memory_space<vmem>>, vector<2x32xf32>
    %cst_144 = arith.constant dense<0.000000e+00> : vector<2x32xf32>
    %253 = tpu.matmul %250, %219, %cst_144 {dimension_numbers = #tpu.dot_dimension_numbers<[1], [0], [0], [1], [0, 0, 1, 1], [], []>} : vector<2x32xf32>, vector<32x32xf32>, vector<2x32xf32> -> vector<2x32xf32>
    %254 = arith.addf %252, %253 : vector<2x32xf32>
    %255 = math.tanh %254 : vector<2x32xf32>
    %256 = arith.select %216, %255, %251 : vector<2x32xi1>, vector<2x32xf32>
    %c14_145 = arith.constant 14 : index
    %c0_146 = arith.constant 0 : index
    %257 = vector.load %arg9[%c14_145, %c0_146] : memref<16x32xf32, #tpu.memory_space<vmem>>, vector<2x32xf32>
    %cst_147 = arith.constant dense<0.000000e+00> : vector<2x32xf32>
    %258 = tpu.matmul %255, %219, %cst_147 {dimension_numbers = #tpu.dot_dimension_numbers<[1], [0], [0], [1], [0, 0, 1, 1], [], []>} : vector<2x32xf32>, vector<32x32xf32>, vector<2x32xf32> -> vector<2x32xf32>
    %259 = arith.addf %257, %258 : vector<2x32xf32>
    %260 = math.tanh %259 : vector<2x32xf32>
    %261 = arith.select %218, %260, %256 : vector<2x32xi1>, vector<2x32xf32>
    %c0_148 = arith.constant 0 : index
    %c0_149 = arith.constant 0 : index
    %262 = vector.load %arg7[%c0_148, %c0_149] : memref<41x128xf32, #tpu.memory_space<vmem>>, vector<8x128xf32>
    %cst_150 = arith.constant dense<0.000000e+00> : vector<2x128xf32>
    %263 = tpu.matmul %126, %262, %cst_150 {dimension_numbers = #tpu.dot_dimension_numbers<[1], [0], [0], [1], [0, 0, 1, 1], [], []>} : vector<2x8xf32>, vector<8x128xf32>, vector<2x128xf32> -> vector<2x128xf32>
    %c8_151 = arith.constant 8 : index
    %c0_152 = arith.constant 0 : index
    %264 = vector.load %arg7[%c8_151, %c0_152] : memref<41x128xf32, #tpu.memory_space<vmem>>, vector<32x128xf32>
    %cst_153 = arith.constant dense<0.000000e+00> : vector<2x128xf32>
    %265 = tpu.matmul %261, %264, %cst_153 {dimension_numbers = #tpu.dot_dimension_numbers<[1], [0], [0], [1], [0, 0, 1, 1], [], []>} : vector<2x32xf32>, vector<32x128xf32>, vector<2x128xf32> -> vector<2x128xf32>
    %266 = arith.addf %263, %265 : vector<2x128xf32>
    %c40 = arith.constant 40 : index
    %c0_154 = arith.constant 0 : index
    %267 = vector.load %arg7[%c40, %c0_154] : memref<41x128xf32, #tpu.memory_space<vmem>>, vector<1x128xf32>
    %268 = vector.broadcast %267 : vector<1x128xf32> to vector<2x128xf32>
    %269 = arith.addf %266, %268 : vector<2x128xf32>
    %cst_155 = arith.constant 0.000000e+00 : f32
    %270 = vector.broadcast %cst_155 : f32 to vector<2x128xf32>
    %271 = arith.subf %270, %269 : vector<2x128xf32>
    %272 = math.exp %271 : vector<2x128xf32>
    %cst_156 = arith.constant 1.000000e+00 : f32
    %273 = vector.broadcast %cst_156 : f32 to vector<2x128xf32>
    %274 = arith.addf %273, %272 : vector<2x128xf32>
    %275 = tpu.reciprocal %274 {approx = true} : vector<2x128xf32> -> vector<2x128xf32>
    %c0_157 = arith.constant 0 : index
    %c0_158 = arith.constant 0 : index
    %276 = vector.load %arg8[%c0_157, %c0_158] : memref<2x128xf32, #tpu.memory_space<vmem>>, vector<2x128xf32>
    tpu.vector_store %arg8[%c0_157, %c0_158], %275 {strides = array<i32>} : memref<2x128xf32, #tpu.memory_space<vmem>>, vector<2x128xf32>,
    return
  }
}

</mosaic_0001>

<bundles_post_ra>
// kernel: multi_mode_forward.1
= control target key start
LH: loop header
LB: loop body
LE: loop exit
PB: predicated region body
PF: predicated region fallthrough
CT: control target
= control target key end

     0   :  { %13 = vsyncpa [#allocation5], 0  ;;  %s3990_s0 = inlined_call_operand.vmem [shape: f32[4,512], index: 0, kind: input, shape index: {}]   ;;  %s3991_s1 = inlined_call_operand.vmem [shape: f32[9,8,4], index: 1, kind: input, shape index: {}]   ;;  %s3992_s2 = inlined_call_operand.vmem [shape: f32[8,1], index: 2, kind: input, shape index: {}]   ;;  %s3993_s3 = inlined_call_operand.vmem [shape: s32[16], index: 3, kind: input, shape index: {}]   ;;  %s3994_s4 = inlined_call_operand.vmem [shape: f32[20,32], index: 4, kind: input, shape index: {}]   ;;  %s3995_s5 = inlined_call_operand.vmem [shape: f32[32,32], index: 5, kind: input, shape index: {}]   ;;  %s3996_s6 = inlined_call_operand.vmem [shape: s32[2], index: 6, kind: input, shape index: {}]   ;;  %s3997_s7 = inlined_call_operand.vmem [shape: f32[41,128], index: 7, kind: input, shape index: {}]   ;;  %s3998_s8 = inlined_call_operand.hbm [shape: f32[2,128], index: 8, kind: output, shape index: {}]  }
   0x1   :  { %14 = vsyncpa [#allocation7], 0 }
   0x2   :  { %15 = vsyncpa [#allocation4], 0  ;;  %s28_s29 = sshll.u32 %s3993_s3, 4  ;;  %s42_s10 = sshll.u32 %s3996_s6, 4  ;;  %s29_s29 = int_to_ptr.vmem [resolvable:$true] %s28_s29  ;;  %s43_s10 = int_to_ptr.vmem [resolvable:$true] %s42_s10 }
   0x3   :  { %s3115_s11 = scalar_lea.vmem %s29_s29, 16  ;;  %p3120_p1 = scmp.lt.s32.totalorder %s29_s29, %s29_s29 }
   0x4   :  { %p3116_p0 = scmp.ne.s32.totalorder %s29_s29, %s3115_s11  ;;  %p3121_p2 = scmp.lt.s32.totalorder %s3115_s11, %s3115_s11 }
   0x6   :  { %p3122_p3 = por %p3121_p2, %p3120_p1 }
   0x8   :  { %p3123_p4 = pnand %p3122_p3, %p3116_p0 }
   0xa   :  { %3126 = shalt.err (!%p3123_p4)
}
   0xb   :  { %s3165_s12 = smov [#allocation3]   ;;  %s3127_s13 = scalar_lea.vmem %s43_s10, 16 }
   0xc   :  { %31 = dma.vmem_to_smem %s29_s29, 16, %s3165_s12, [#allocation5]  }
   0xd   :  { %p3128_p5 = scmp.ne.s32.totalorder %s43_s10, %s3127_s13  ;;  %p3132_p6 = scmp.lt.s32.totalorder %s43_s10, %s43_s10 }
   0xe   :  { %p3133_p7 = scmp.lt.s32.totalorder %s3127_s13, %s3127_s13 }
  0x10   :  { %p3134_p8 = por %p3133_p7, %p3132_p6 }
  0x12   :  { %p3135_p9 = pnand %p3134_p8, %p3128_p5 }
  0x14   :  { %3138 = shalt.err (!%p3135_p9)
}
  0x15   :  { %s3166_s3 = smov [#allocation6]  }
  0x16   :  { %45 = dma.vmem_to_smem %s43_s10, 16, %s3166_s3, [#allocation7]  }
  0x17   :  { %3159 = dma.done.wait [#allocation5], 16  }
  0x18   :  { %3160 = vsyncadd [#allocation5], 4294967280 }
  0x19   :  { %3161 = dma.done.wait [#allocation7], 16  }
  0x1a   :  { %3162 = vsyncadd [#allocation7], 4294967280 }
  0x1b   :  { %54 = sfence }
  0x1c   :  { %v3234_v0 = vld [vmem:[%s3990_s0] sm:$0xff]  ;;  %v3239_v1 = vld [vmem:[%s3990_s0 + $0x8] sm:$0xff]  ;;  %s3167_s17 = smov 16   ;;  %v3168_v4 = vmov 0   ;;  %v3169_v5 = vmov 0.0   ;;  %s3170_s0 = smov 17   ;;  %v57_v7 = vlaneseq }
  0x1d   :  { %118 = vrot.lane.b32.xlu0 %v3234_v0, %s3167_s17  ;;  %v3245_v2 = vcombine.high %v3239_v1, %v3239_v1  ;;  %v3249_v3 = vcombine.high %v3234_v0, %v3234_v0  ;;  %226 = vmatprep.mubr.f32.mxu0 %v3169_v5  ;;  %s3171_s18 = smov 15   ;;  %s3172_s19 = smov 1   ;;  %v1768_v6 = vld [vmem:[%s3992_s2] sm:$0xff]  ;;  %vm149_vm2 = vcmask 1043456   ;;  %v3331_v25 = vld [vmem:[%s3991_s1 + $0x8] sm:$0xff]  ;;  %vm145_vm7 = vcmask 31744  }
  0x1e   :  { %3092 = vset.pattern.permute.xlu0 %v3168_v4  ;;  %297 = vmatprep.mubr.f32.mxu1 %v3169_v5  ;;  %s3173_s20 = smov 127   ;;  %s3174_s21 = smov 113   ;;  %v3291_v8 = vand.u32 127, %v57_v7  ;;  %v3366_v33 = vld [vmem:[%s3991_s1] sm:$0xff]  ;;  %v3399_v42 = vld [vmem:[%s3991_s1 + $0x10] sm:$0xff]  ;;  %v3422_v50 = vld [vmem:[%s3991_s1 + $0x18] sm:$0xff] }
  0x1f   :  { %124 = vrot.lane.b32.xlu1 %v3245_v2, %s3167_s17  ;;  %s3175_s22 = smov 112   ;;  %s3176_s23 = smov 111   ;;  %v3443_v55 = vld [vmem:[%s3991_s1 + $0x20] sm:$0xff]  ;;  %v3469_v61 = vld [vmem:[%s3991_s1 + $0x28] sm:$0xff] }
  0x20   :  { %v3294_v9 = vadd.s32 128, %v3291_v8  ;;  %v66_v11 = vshra.s32 %v3291_v8, 4  ;;  %vm126_vm0 = vcmp.lt.s32.totalorder %v3291_v8, 16  ;;  %v62_v17 = vand.u32 15, %v3291_v8  ;;  %s2900_s25 = sld [smem:[#allocation3 + $0x8]] }
  0x21   :  { %120 = vrot.lane.b32.xlu0 %v3249_v3, %s3167_s17  ;;  %vm88_vm5 = vcmp.lt.s32.totalorder %v3291_v8, 17  ;;  %vm469_vm11 = vcmp.lt.s32.totalorder %v3291_v8, 15  ;;  %vm665_vm15 = vcmp.lt.s32.totalorder %v3291_v8, 1  ;;  %s2901_s9 = sld [smem:[#allocation3 + $0x1]] }
  0x22   :  { %v67_v10 = vshra.s32 %v3294_v9, 4  ;;  %v3300_v14 = vand.u32 15, %v66_v11  ;;  %v63_v15 = vand.u32 15, %v3294_v9  ;;  %vm3324_vm6 = vcmp.ge.s32.totalorder %v62_v17, 1  ;;  %v3498_v11 = vld [vmem:[%s3991_s1 + $0x30] sm:$0xff]  ;;  %s2902_s10 = sld [smem:[#allocation3 + $0x9]] }
  0x23   :  { %80 = vrot.lane.b32.xlu1 %v3234_v0, %s3170_s0  ;;  %vm3369_vm12 = vcmp.le.s32.totalorder %v62_v17, 14  ;;  %s2903_s15 = sld [smem:[#allocation3 + $0x2]] }
  0x24   :  { %v3298_v12 = vand.u32 15, %v67_v10  ;;  %vm93_vm3 = vcmp.ge.s32.totalorder %v3300_v14, 1  ;;  %vm3314_vm4 = vcmp.ge.s32.totalorder %v63_v15, 1  ;;  %vm3354_vm10 = vcmp.le.s32.totalorder %v63_v15, 14  ;;  %s2904_s16 = sld [smem:[#allocation3 + $0xa]] }
  0x25   :  { %82 = vrot.lane.b32.xlu0 %v3249_v3, %s3170_s0  ;;  %vm101_vm9 = vmand %vm93_vm3, %vm3324_vm6  ;;  %s2906_s24 = sld [smem:[#allocation3 + $0xb]] }
  0x26   :  { %vm94_vm1 = vcmp.ge.s32.totalorder %v3298_v12, 1  ;;  %vm478_vm14 = vmand %vm93_vm3, %vm3369_vm12  ;;  %s1942_s30 = scalar_lea.vmem %s3994_s4, %s2900_s25  ;;  %s2907_s29 = sld [smem:[#allocation3 + $0x4]] }
  0x27   :  { %86 = vrot.lane.b32.xlu1 %v3245_v2, %s3170_s0  ;;  %vm102_vm8 = vmand %vm94_vm1, %vm3314_vm4  ;;  %s1946_s13 = scalar_lea.vmem %s3994_s4, %s2901_s9  ;;  %s2909_s6 = sld [smem:[#allocation3 + $0x5]] }
  0x28   :  { %vm479_vm13 = vmand %vm94_vm1, %vm3354_vm10  ;;  %s1950_s14 = scalar_lea.vmem %s3994_s4, %s2902_s10  ;;  %s2914_s26 = sld [smem:[#allocation3 + $0xf]] }
  0x29   :  { %461 = vrot.lane.b32.xlu0 %v3234_v0, %s3171_s18 }
  0x2b   :  { %463 = vrot.lane.b32.xlu1 %v3249_v3, %s3171_s18  ;;  %s1966_s28 = scalar_lea.vmem %s3994_s4, %s2906_s24 }
  0x2c   :  { %s1970_s11 = scalar_lea.vmem %s3994_s4, %s2907_s29 }
  0x2d   :  { %467 = vrot.lane.b32.xlu0 %v3245_v2, %s3171_s18 }
  0x2e   :  { %s1998_s10 = scalar_lea.vmem %s3994_s4, %s2914_s26 }
  0x2f   :  { %657 = vrot.lane.b32.xlu1 %v3234_v0, %s3172_s19 }
  0x31   :  { %659 = vrot.lane.b32.xlu0 %v3249_v3, %s3172_s19 }
  0x33   :  { %663 = vrot.lane.b32.xlu1 %v3245_v2, %s3172_s19 }
  0x35   :  { %1006 = vrot.lane.b32.xlu0 %v3249_v3, %s3173_s20 }
  0x37   :  { %1008 = vrot.lane.b32.xlu1 %v3239_v1, %s3173_s20 }
  0x39   :  { %1004 = vrot.lane.b32.xlu0 %v3234_v0, %s3173_s20 }
  0x3b   :  { %1194 = vrot.lane.b32.xlu1 %v3249_v3, %s3174_s21 }
  0x3d   :  { %1196 = vrot.lane.b32.xlu0 %v3239_v1, %s3174_s21 }
  0x3f   :  { %1192 = vrot.lane.b32.xlu1 %v3234_v0, %s3174_s21 }
  0x41   :  { %1390 = vrot.lane.b32.xlu0 %v3249_v3, %s3175_s22 }
  0x43   :  { %1392 = vrot.lane.b32.xlu1 %v3239_v1, %s3175_s22 }
  0x45   :  { %1388 = vrot.lane.b32.xlu0 %v3234_v0, %s3175_s22 }
  0x47   :  { %1578 = vrot.lane.b32.xlu1 %v3249_v3, %s3176_s23 }
  0x49   :  { %1580 = vrot.lane.b32.xlu0 %v3239_v1, %s3176_s23 }
  0x4b   :  { %1576 = vrot.lane.b32.xlu1 %v3234_v0, %s3176_s23 }
  0x4d   :  { %122 = vrot.lane.b32.xlu0 %v3239_v1, %s3167_s17  ;;  %s1978_s17 = scalar_lea.vmem %s3994_s4, %s2909_s6 }
  0x4f   :  { %84 = vrot.lane.b32.xlu1 %v3239_v1, %s3170_s0 }
  0x51   :  { %465 = vrot.lane.b32.xlu0 %v3239_v1, %s3171_s18 }
  0x53   :  { %661 = vrot.lane.b32.xlu1 %v3239_v1, %s3172_s19  ;;  %s2911_s19 = sld [smem:[#allocation3 + $0x6]] }
  0x55   :  { %1771 = vperm.xlu0 %3092, %v1768_v6   ;;  %v3488_v6 = vadd.s32 384, %v3291_v8 }
  0x57   :  { %1010 = vrot.lane.b32.xlu1 %v3245_v2, %s3173_s20  ;;  %v69_v20 = vshra.s32 %v3488_v6, 4  ;;  %s1958_s20 = scalar_lea.vmem %s3994_s4, %s2904_s16 }
  0x59   :  { %1394 = vrot.lane.b32.xlu0 %v3245_v2, %s3175_s22  ;;  %s2915_s22 = sld [smem:[#allocation6 + $0x1]] }
  0x5b   :  { %1198 = vrot.lane.b32.xlu1 %v3245_v2, %s3174_s21  ;;  %s2002_s21 = sld [smem:[#allocation6]] }
  0x5f   :  { %1582 = vrot.lane.b32.xlu1 %v3245_v2, %s3176_s23  ;;  %s2905_s23 = sld [smem:[#allocation3 + $0x3]] }
  0x65   :  { %s1962_s2 = scalar_lea.vmem %s3994_s4, %s2905_s23  ;;  %s1986_s23 = scalar_lea.vmem %s3994_s4, %s2911_s19 }
  0x8f   :  { %v119_v13 = vpop.permute.xlu0 %118 }
  0x91   :  { %v3304_v16 = vpop.permute.xlu1 %124 }
  0x92   :  { %v130_v18 = vsel %vm126_vm0, %v3304_v16, %v119_v13 }
  0x93   :  { %v3311_v19 = vpop.permute.xlu0 %120  ;;  %v139_v26 = vsel %vm93_vm3, %v130_v18, 0.0  ;;  %vm1206_vm3 = vcmp.le.s32.totalorder %v3298_v12, 14 }
  0x94   :  { %v129_v21 = vsel %vm126_vm0, %v119_v13, %v3311_v19 }
  0x95   :  { %v81_v22 = vpop.permute.xlu1 %80  ;;  %v140_v23 = vsel %vm94_vm1, %v129_v21, 0.0  ;;  %vm1012_vm1 = vcmp.lt.s32.totalorder %v3291_v8, 127 }
  0x96   :  { %2835 = vmatprep.subr.msk.mxu0 %vm149_vm2, %v140_v23 }
  0x97   :  { %2836 = vmatpush1.msk.msra.mxu0 %vm149_vm2, %v139_v26  ;;  %v3341_v27 = vpop.permute.xlu0 %82  ;;  %v3523_v26 = vld [vmem:[%s3991_s1 + $0x38] sm:$0xff] }
  0x98   :  { %v91_v28 = vsel %vm88_vm5, %v81_v22, %v3341_v27  ;;  %2837 = vmatmul.mubr.msk.f32.vlgmr.msra.gmra.mxu0 %vm145_vm7, %v3331_v25 }
  0x99   :  { %v114_v29 = vsel %vm102_vm8, %v91_v28, 0.0  ;;  %v3352_v30 = vpop.permute.xlu1 %86  ;;  %383 = vmatprep.mubr.f32.mxu0 %v3169_v5  ;;  %vm4000_vm8 = vcmp.lt.s32.totalorder %v3291_v8, 113 }
  0x9a   :  { %v92_v32 = vsel %vm88_vm5, %v3352_v30, %v81_v22  ;;  %2841 = vmatprep.subr.msk.mxu0 %vm149_vm2, %v114_v29 }
  0x9b   :  { %v113_v34 = vsel %vm101_vm9, %v92_v32, 0.0  ;;  %v462_v35 = vpop.permute.xlu0 %461  ;;  %vm1205_vm9 = vcmp.le.s32.totalorder %v3300_v14, 14 }
  0x9c   :  { %2842 = vmatpush1.msk.msra.mxu0 %vm149_vm2, %v113_v34 }
  0x9d   :  { %v3378_v37 = vpop.permute.xlu1 %463  ;;  %2843 = vmatmul.mubr.msk.f32.vlgmr.msra.gmra.mxu0 %vm145_vm7, %v3366_v33 }
  0x9e   :  { %v472_v38 = vsel %vm469_vm11, %v462_v35, %v3378_v37  ;;  %575 = vmatprep.mubr.f32.mxu0 %v3169_v5 }
  0x9f   :  { %v491_v39 = vsel %vm479_vm13, %v472_v38, 0.0  ;;  %v3390_v40 = vpop.permute.xlu0 %467  ;;  %vm1210_vm13 = vmand %vm1206_vm3, %vm3314_vm4  ;;  %v3532_v38 = vand.u32 15, %v69_v20 }
  0xa0   :  { %v473_v41 = vsel %vm469_vm11, %v3390_v40, %v462_v35  ;;  %2848 = vmatprep.subr.msk.mxu0 %vm149_vm2, %v491_v39  ;;  %v65_v35 = vand.u32 15, %v3488_v6 }
  0xa1   :  { %v490_v43 = vsel %vm478_vm14, %v473_v41, 0.0  ;;  %v658_v44 = vpop.permute.xlu1 %657  ;;  %vm1209_vm14 = vmand %vm1205_vm9, %vm3324_vm6 }
  0xa2   :  { %2849 = vmatpush1.msk.msra.mxu0 %vm149_vm2, %v490_v43  ;;  %v1787_v43 = vshra.s32 %v3488_v6, 8 }
  0xa3   :  { %v3403_v45 = vpop.permute.xlu0 %659  ;;  %2850 = vmatmul.mubr.msk.f32.vlgmr.msra.gmra.mxu0 %vm145_vm7, %v3399_v42 }
  0xa4   :  { %v668_v46 = vsel %vm665_vm15, %v658_v44, %v3403_v45  ;;  %763 = vmatprep.mubr.f32.mxu0 %v3169_v5 }
  0xa5   :  { %v679_v47 = vsel %vm3314_vm4, %v668_v46, 0.0  ;;  %v3413_v48 = vpop.permute.xlu1 %663  ;;  %vm3999_vm4 = vcmp.lt.s32.totalorder %v3291_v8, 112  ;;  %v3574_v46 = vld [vmem:[%s3991_s1 + $0x40] sm:$0xff]  ;;  %s1954_s1 = scalar_lea.vmem %s3994_s4, %s2903_s15 }
  0xa6   :  { %v669_v49 = vsel %vm665_vm15, %v3413_v48, %v658_v44  ;;  %2855 = vmatprep.subr.msk.mxu0 %vm149_vm2, %v679_v47 }
  0xa7   :  { %v678_v51 = vsel %vm3324_vm6, %v669_v49, 0.0  ;;  %v1007_v52 = vpop.permute.xlu0 %1006  ;;  %vm1584_vm6 = vcmp.lt.s32.totalorder %v3291_v8, 111 }
  0xa8   :  { %2856 = vmatpush1.msk.msra.mxu0 %vm149_vm2, %v678_v51 }
  0xa9   :  { %v3428_v53 = vpop.permute.xlu1 %1008  ;;  %2857 = vmatmul.mubr.msk.f32.vlgmr.msra.gmra.mxu0 %vm145_vm7, %v3422_v50  ;;  %2862 = vmatprep.subr.msk.mxu0 %vm149_vm2, %v3249_v3 }
  0xaa   :  { %v1014_v54 = vsel %vm1012_vm1, %v1007_v52, %v3428_v53  ;;  %2863 = vmatpush1.msk.msra.mxu0 %vm149_vm2, %v3234_v0  ;;  %922 = vmatprep.mubr.f32.mxu0 %v3169_v5  ;;  %v3481_v0 = vadd.s32 256, %v3291_v8 }
  0xab   :  { %v1026_v56 = vsel %vm3354_vm10, %v1014_v54, 0.0  ;;  %v3447_v57 = vpop.permute.xlu0 %1004 }
  0xac   :  { %v1015_v58 = vsel %vm1012_vm1, %v3447_v57, %v1007_v52  ;;  %2869 = vmatprep.subr.msk.mxu0 %vm149_vm2, %v1026_v56  ;;  %v68_v17 = vshra.s32 %v3481_v0, 4  ;;  %v64_v28 = vand.u32 15, %v3481_v0 }
  0xad   :  { %v1025_v59 = vsel %vm3369_vm12, %v1015_v58, 0.0  ;;  %v1195_v60 = vpop.permute.xlu1 %1194  ;;  %2864 = vmatmul.mubr.msk.f32.vlgmr.msra.gmra.mxu0 %vm145_vm7, %v3443_v55 }
  0xae   :  { %2870 = vmatpush1.msk.msra.mxu0 %vm149_vm2, %v1025_v59  ;;  %1110 = vmatprep.mubr.f32.mxu0 %v3169_v5  ;;  %v3526_v29 = vand.u32 15, %v68_v17 }
  0xaf   :  { %v3471_v62 = vpop.permute.xlu0 %1196 }
  0xb0   :  { %v1202_v63 = vsel %vm4000_vm8, %v1195_v60, %v3471_v62 }
  0xb1   :  { %v1222_v3 = vsel %vm1210_vm13, %v1202_v63, 0.0  ;;  %v3483_v4 = vpop.permute.xlu1 %1192  ;;  %2871 = vmatmul.mubr.msk.f32.vlgmr.msra.gmra.mxu0 %vm145_vm7, %v3469_v61  ;;  %vm1590_vm13 = vmand %vm1206_vm3, %vm3354_vm10  ;;  %vm95_vm10 = vcmp.ge.s32.totalorder %v3526_v29, 1 }
  0xb2   :  { %v1203_v10 = vsel %vm4000_vm8, %v3483_v4, %v1195_v60  ;;  %2876 = vmatprep.subr.msk.mxu0 %vm149_vm2, %v1222_v3  ;;  %1306 = vmatprep.mubr.f32.mxu0 %v3169_v5  ;;  %vm3563_vm8 = vcmp.ge.s32.totalorder %v65_v35, 1 }
  0xb3   :  { %v1221_v13 = vsel %vm1209_vm14, %v1203_v10, 0.0  ;;  %v1391_v15 = vpop.permute.xlu0 %1390  ;;  %vm3550_vm14 = vmand %vm1205_vm9, %vm3369_vm12 }
  0xb4   :  { %2877 = vmatpush1.msk.msra.mxu0 %vm149_vm2, %v1221_v13 }
  0xb5   :  { %v3503_v18 = vpop.permute.xlu1 %1392  ;;  %2878 = vmatmul.mubr.msk.f32.vlgmr.msra.gmra.mxu0 %vm145_vm7, %v3498_v11 }
  0xb6   :  { %v1398_v21 = vsel %vm3999_vm4, %v1391_v15, %v3503_v18  ;;  %1494 = vmatprep.mubr.f32.mxu0 %v3169_v5 }
  0xb7   :  { %v1410_v22 = vsel %vm1206_vm3, %v1398_v21, 0.0  ;;  %v3514_v23 = vpop.permute.xlu0 %1388  ;;  %vm3556_vm3 = vcmp.ge.s32.totalorder %v64_v28, 1 }
  0xb8   :  { %v1399_v24 = vsel %vm3999_vm4, %v3514_v23, %v1391_v15  ;;  %2883 = vmatprep.subr.msk.mxu0 %vm149_vm2, %v1410_v22  ;;  %vm96_vm4 = vcmp.ge.s32.totalorder %v3532_v38, 1  ;;  %vm3582_vm12 = vmand %vm95_vm10, %vm3556_vm3 }
  0xb9   :  { %v1409_v32 = vsel %vm1205_vm9, %v1399_v24, 0.0  ;;  %v1579_v34 = vpop.permute.xlu1 %1578  ;;  %vm3586_vm9 = vcmp.le.s32.totalorder %v65_v35, 14 }
  0xba   :  { %2884 = vmatpush1.msk.msra.mxu0 %vm149_vm2, %v1409_v32 }
  0xbb   :  { %2885 = vmatmul.mubr.msk.f32.vlgmr.msra.gmra.mxu0 %vm145_vm7, %v3523_v26  ;;  %v3541_v39 = vpop.permute.xlu0 %1580 }
  0xbc   :  { %v1586_v41 = vsel %vm1584_vm6, %v1579_v34, %v3541_v39  ;;  %1686 = vmatprep.mubr.f32.mxu0 %v3169_v5 }
  0xbd   :  { %v1602_v31 = vsel %vm1590_vm13, %v1586_v41, 0.0  ;;  %v3560_v44 = vpop.permute.xlu1 %1576  ;;  %vm3598_vm13 = vmand %vm96_vm4, %vm3563_vm8 }
  0xbe   :  { %v1587_v14 = vsel %vm1584_vm6, %v3560_v44, %v1579_v34  ;;  %2890 = vmatprep.subr.msk.mxu0 %vm149_vm2, %v1602_v31 }
  0xbf   :  { %v1601_v47 = vsel %vm3550_vm14, %v1587_v14, 0.0  ;;  %v123_v49 = vpop.permute.xlu0 %122  ;;  %vm3626_vm14 = vmand %vm96_vm4, %vm3586_vm9 }
  0xc0   :  { %v128_v54 = vsel %vm126_vm0, %v3311_v19, %v123_v49  ;;  %2891 = vmatpush1.msk.msra.mxu0 %vm149_vm2, %v1601_v47  ;;  %v127_v58 = vsel %vm126_vm0, %v123_v49, %v3304_v16  ;;  %vm3618_vm0 = vcmp.le.s32.totalorder %v64_v28, 14 }
  0xc1   :  { %v85_v59 = vpop.permute.xlu1 %84  ;;  %2892 = vmatmul.mubr.msk.f32.vlgmr.msra.gmra.mxu0 %vm145_vm7, %v3574_v46  ;;  %v142_v19 = vsel %vm96_vm4, %v127_v58, 0.0  ;;  %v141_v60 = vsel %vm95_vm10, %v128_v54, 0.0 }
  0xc2   :  { %v89_v63 = vsel %vm88_vm5, %v85_v59, %v3352_v30  ;;  %v90_v3 = vsel %vm88_vm5, %v3341_v27, %v85_v59  ;;  %2838 = vmatprep.subr.msk.mxu1 %vm149_vm2, %v142_v19  ;;  %vm480_vm5 = vmand %vm95_vm10, %vm3618_vm0  ;;  %vm4025_vm10 = vcmp.lt.s32.totalorder %v3291_v8, 113 }
  0xc3   :  { %v115_v30 = vsel %vm3582_vm12, %v90_v3, 0.0  ;;  %v116_v27 = vsel %vm3598_vm13, %v89_v63, 0.0  ;;  %2839 = vmatpush1.msk.msra.mxu1 %vm149_vm2, %v141_v60  ;;  %v466_v13 = vpop.permute.xlu0 %465  ;;  %vm4027_vm12 = vcmp.lt.s32.totalorder %v3291_v8, 112 }
  0xc4   :  { %v470_v15 = vsel %vm469_vm11, %v466_v13, %v3390_v40  ;;  %2840 = vmatmul.mubr.msk.f32.vlgmr.msra.gmra.mxu1 %vm145_vm7, %v3331_v25  ;;  %2844 = vmatprep.subr.msk.mxu1 %vm149_vm2, %v116_v27  ;;  %v471_v17 = vsel %vm469_vm11, %v3378_v37, %v466_v13  ;;  %vm1208_vm11 = vcmp.le.s32.totalorder %v3532_v38, 14 }
  0xc5   :  { %v493_v20 = vsel %vm3626_vm14, %v470_v15, 0.0  ;;  %v662_v21 = vpop.permute.xlu1 %661  ;;  %2845 = vmatpush1.msk.msra.mxu1 %vm149_vm2, %v115_v30  ;;  %454 = vmatprep.mubr.f32.mxu1 %v3169_v5  ;;  %v492_v22 = vsel %vm480_vm5, %v471_v17, 0.0  ;;  %vm1212_vm4 = vmand %vm1208_vm11, %vm3563_vm8  ;;  %vm1939_vm5 = vcmask 253952  }
  0xc6   :  { %v666_v25 = vsel %vm665_vm15, %v662_v21, %v3413_v48  ;;  %2851 = vmatprep.subr.msk.mxu1 %vm149_vm2, %v493_v20  ;;  %v667_v37 = vsel %vm665_vm15, %v3403_v45, %v662_v21  ;;  %vm1207_vm15 = vcmp.le.s32.totalorder %v3526_v29, 14  ;;  %vm1592_vm13 = vmand %vm1208_vm11, %vm3586_vm9  ;;  %v1785_v29 = vshra.s32 %v3294_v9, 8 }
  0xc7   :  { %v681_v40 = vsel %vm3563_vm8, %v666_v25, 0.0  ;;  %v680_v48 = vsel %vm3556_vm3, %v667_v37, 0.0  ;;  %vm4026_vm8 = vmmov %vm4025_vm10 }
  0xc8   :  { %2846 = vmatmul.mubr.msk.f32.vlgmr.msra.gmra.mxu1 %vm145_vm7, %v3366_v33  ;;  %vm1591_vm14 = vmand %vm1207_vm15, %vm3618_vm0 }
  0xc9   :  { %2852 = vmatpush1.msk.msra.mxu1 %vm149_vm2, %v492_v22  ;;  %v1011_v24 = vpop.permute.xlu1 %1010  ;;  %646 = vmatprep.mubr.f32.mxu1 %v3169_v5 }
  0xca   :  { %2858 = vmatprep.subr.msk.mxu1 %vm149_vm2, %v681_v40  ;;  %v1016_v33 = vsel %vm1012_vm1, %v1011_v24, %v3447_v57 }
  0xcb   :  { %v1028_v32 = vsel %vm3586_vm9, %v1016_v33, 0.0 }
  0xcc   :  { %2853 = vmatmul.mubr.msk.f32.vlgmr.msra.gmra.mxu1 %vm145_vm7, %v3399_v42  ;;  %v1013_v42 = vsel %vm1012_vm1, %v3428_v53, %v1011_v24  ;;  %vm1211_vm1 = vmand %vm1207_vm15, %vm3556_vm3 }
  0xcd   :  { %2859 = vmatpush1.msk.msra.mxu1 %vm149_vm2, %v680_v48  ;;  %834 = vmatprep.mubr.f32.mxu1 %v3169_v5  ;;  %v1199_v45 = vpop.permute.xlu1 %1198  ;;  %vm4028_vm3 = vmmov %vm4027_vm12 }
  0xce   :  { %2865 = vmatprep.subr.msk.mxu1 %vm149_vm2, %v3245_v2  ;;  %v1204_v2 = vsel %vm4025_vm10, %v1199_v45, %v3483_v4  ;;  %v1201_v53 = vsel %vm4026_vm8, %v3471_v62, %v1199_v45  ;;  %v1784_v45 = vshra.s32 %v3291_v8, 8 }
  0xcf   :  { %v1224_v57 = vsel %vm1212_vm4, %v1204_v2, 0.0  ;;  %v1223_v34 = vsel %vm1211_vm1, %v1201_v53, 0.0 }
  0xd0   :  { %2860 = vmatmul.mubr.msk.f32.vlgmr.msra.gmra.mxu1 %vm145_vm7, %v3422_v50  ;;  %v3680_v28 = vpop.permute.xlu0 %1771  ;;  %v1027_v50 = vsel %vm3618_vm0, %v1013_v42, 0.0 }
  0xd1   :  { %2866 = vmatpush1.msk.msra.mxu1 %vm149_vm2, %v3239_v1  ;;  %993 = vmatprep.mubr.f32.mxu1 %v3169_v5 }
  0xd2   :  { %2872 = vmatprep.subr.msk.mxu1 %vm149_vm2, %v1028_v32 }
  0xd4   :  { %2867 = vmatmul.mubr.msk.f32.vlgmr.msra.gmra.mxu1 %vm145_vm7, %v3443_v55  ;;  %v1395_v1 = vpop.permute.xlu0 %1394  ;;  %v1583_v55 = vpop.permute.xlu1 %1582 }
  0xd5   :  { %2873 = vmatpush1.msk.msra.mxu1 %vm149_vm2, %v1027_v50  ;;  %1181 = vmatprep.mubr.f32.mxu1 %v3169_v5  ;;  %v1400_v4 = vsel %vm4027_vm12, %v1395_v1, %v3514_v23  ;;  %v1397_v62 = vsel %vm4028_vm3, %v3503_v18, %v1395_v1  ;;  %v1585_v23 = vsel %vm1584_vm6, %v3541_v39, %v1583_v55  ;;  %v3177_v39 = vmov 0.00390625  }
  0xd6   :  { %2879 = vmatprep.subr.msk.mxu1 %vm149_vm2, %v1224_v57  ;;  %v1412_v35 = vsel %vm1208_vm11, %v1400_v4, 0.0  ;;  %v1411_v18 = vsel %vm1207_vm15, %v1397_v62, 0.0  ;;  %v1603_v41 = vsel %vm1591_vm14, %v1585_v23, 0.0  ;;  %v3770_v4 = vld [vmem:[%s3995_s5 + $0x18] sm:$0xff]  ;;  %vm2022_vm11 = vcmask 261120  }
  0xd8   :  { %2874 = vmatmul.mubr.msk.f32.vlgmr.msra.gmra.mxu1 %vm145_vm7, %v3469_v61  ;;  %v1588_v61 = vsel %vm1584_vm6, %v1583_v55, %v3560_v44 }
  0xd9   :  { %2880 = vmatpush1.msk.msra.mxu1 %vm149_vm2, %v1223_v34  ;;  %1377 = vmatprep.mubr.f32.mxu1 %v3169_v5  ;;  %v1604_v38 = vsel %vm1592_vm13, %v1588_v61, 0.0  ;;  %v3776_v34 = vld [vmem:[%s3995_s5 + $0x10] sm:$0xff]  ;;  %v3785_v61 = vld [vmem:[%s3995_s5 + $0x8] sm:$0xff] }
  0xda   :  { %2886 = vmatprep.subr.msk.mxu1 %vm149_vm2, %v1412_v35 }
  0xdc   :  { %2881 = vmatmul.mubr.msk.f32.vlgmr.msra.gmra.mxu1 %vm145_vm7, %v3498_v11  ;;  %v3754_v11 = vshrl.u32 %v57_v7, 7 }
  0xdd   :  { %2887 = vmatpush1.msk.msra.mxu1 %vm149_vm2, %v1411_v18  ;;  %1565 = vmatprep.mubr.f32.mxu1 %v3169_v5 }
  0xde   :  { %2893 = vmatprep.subr.msk.mxu1 %vm149_vm2, %v1604_v38  ;;  %vm1789_vm6 = vcmp.eq.s32.totalorder %v1785_v29, %v3754_v11  ;;  %vm1791_vm9 = vcmp.eq.s32.totalorder %v1787_v43, %v3754_v11  ;;  %v3792_v38 = vld [vmem:[%s3995_s5] sm:$0xff]  ;;  %s1936_s5 = sld [smem:[#allocation3]]  ;;  %vm2001_vm15 = vcmp.eq.s32.totalorder %v3754_v11, 0  ;;  %vm2005_vm4 = vcmp.eq.s32.totalorder %v3754_v11, 1 }
  0xdf   :  { %2896 = vmatprep.mubr.msk.f32.mxu0 %vm1789_vm6, %v3177_v39  ;;  %vm2716_vm6 = vcmask 64512  }
  0xe0   :  { %2888 = vmatmul.mubr.msk.f32.vlgmr.msra.gmra.mxu1 %vm145_vm7, %v3523_v26 }
  0xe1   :  { %2894 = vmatpush1.msk.msra.mxu1 %vm149_vm2, %v1603_v41  ;;  %1757 = vmatprep.mubr.f32.mxu1 %v3169_v5  ;;  %vm1788_vm2 = vcmp.eq.s32.totalorder %v1784_v45, %v3754_v11 }
  0xe4   :  { %2895 = vmatmul.mubr.msk.f32.vlgmr.msra.gmra.mxu1 %vm145_vm7, %v3574_v46  ;;  %vm3178_vm7 = vmmov 0   ;;  %s1937_s27 = scalar_lea.vmem %s3994_s4, %s1936_s5 }
  0xe5   :  { %2898 = vmatprep.mubr.msk.f32.mxu1 %vm1791_vm9, %v3177_v39 }
 0x158   :  { %v228_v26 = vpop.f32.mrf.mxu0 }
 0x15a   :  { %v230_v12 = vpop.f32.mrf.mxu0 }
 0x15d   :  { %v385_v31 = vpop.f32.mrf.mxu0 }
 0x15e   :  { %v386_v51 = vadd.f32 %v385_v31, %v228_v26 }
 0x15f   :  { %v387_v44 = vpop.f32.mrf.mxu0 }
 0x160   :  { %v388_v56 = vadd.f32 %v387_v44, %v230_v12 }
 0x163   :  { %v577_v36 = vpop.f32.mrf.mxu0 }
 0x164   :  { %v653_v6 = vadd.f32 %v577_v36, %v386_v51 }
 0x165   :  { %v579_v7 = vpop.f32.mrf.mxu0 }
 0x166   :  { %v654_v58 = vadd.f32 %v579_v7, %v388_v56 }
 0x169   :  { %v765_v14 = vpop.f32.mrf.mxu0 }
 0x16a   :  { %v841_v59 = vadd.f32 %v765_v14, %v653_v6 }
 0x16b   :  { %v767_v46 = vpop.f32.mrf.mxu0 }
 0x16c   :  { %v842_v60 = vadd.f32 %v767_v46, %v654_v58 }
 0x16d   :  { %v924_v9 = vpop.f32.mrf.mxu0 }
 0x16e   :  { %v1000_v63 = vadd.f32 %v924_v9, %v841_v59 }
 0x16f   :  { %v926_v47 = vpop.f32.mrf.mxu0 }
 0x170   :  { %v1001_v16 = vadd.f32 %v926_v47, %v842_v60 }
 0x171   :  { %v1112_v49 = vpop.f32.mrf.mxu0 }
 0x172   :  { %v1188_v10 = vadd.f32 %v1112_v49, %v1000_v63  ;;  %v1786_v63 = vshra.s32 %v3481_v0, 8  ;;  %v1938_v0 = vld [vmem:[%s1937_s27] sm:$0x1] }
 0x173   :  { %v1114_v52 = vpop.f32.mrf.mxu0  ;;  %1940 = vst.msk [vmem:[#allocation2] sm:$0x1] %vm1939_vm5, %v1938_v0 }
 0x174   :  { %v1189_v30 = vadd.f32 %v1114_v52, %v1001_v16  ;;  %vm1790_vm0 = vcmp.eq.s32.totalorder %v1786_v63, %v3754_v11  ;;  %v1963_v11 = vld [vmem:[%s1962_s2] sm:$0x1]  ;;  %s2913_s2 = sld [smem:[#allocation3 + $0x7]] }
 0x175   :  { %v1308_v54 = vpop.f32.mrf.mxu0  ;;  %1964 = vst.msk [vmem:[#allocation2 + $0x6] sm:$0x1] %vm1939_vm5, %v1963_v11  ;;  %v1999_v63 = vld [vmem:[%s1998_s10] sm:$0x1] }
 0x176   :  { %v1384_v27 = vadd.f32 %v1308_v54, %v1188_v10  ;;  %v1951_v10 = vld [vmem:[%s1950_s14] sm:$0x1]  ;;  %s2910_s14 = sld [smem:[#allocation3 + $0xd]]  ;;  %2000 = vst.msk [vmem:[#allocation2 + $0xf] sm:$0x1] %vm1939_vm5, %v1999_v63 }
 0x177   :  { %v1310_v19 = vpop.f32.mrf.mxu0  ;;  %1952 = vst.msk [vmem:[#allocation2 + $0x3] sm:$0x1] %vm1939_vm5, %v1951_v10 }
 0x178   :  { %v1385_v15 = vadd.f32 %v1310_v19, %v1189_v30 }
 0x17a   :  { %s1994_s29 = scalar_lea.vmem %s3994_s4, %s2913_s2 }
 0x17b   :  { %v1496_v3 = vpop.f32.mrf.mxu0 }
 0x17c   :  { %v1572_v17 = vadd.f32 %v1496_v3, %v1384_v27  ;;  %s1982_s18 = scalar_lea.vmem %s3994_s4, %s2910_s14 }
 0x17d   :  { %v1498_v13 = vpop.f32.mrf.mxu0 }
 0x17e   :  { %v1573_v21 = vadd.f32 %v1498_v13, %v1385_v15 }
 0x181   :  { %v1688_v20 = vpop.f32.mrf.mxu0 }
 0x182   :  { %v1764_v25 = vadd.f32 %v1688_v20, %v1572_v17 }
 0x183   :  { %v1690_v40 = vpop.f32.mrf.mxu0 }
 0x184   :  { %v1765_v22 = vadd.f32 %v1690_v40, %v1573_v21  ;;  %v299_v37 = vpop.f32.mrf.mxu1  ;;  %v1774_v24 = vadd.f32 %v3680_v28, %v1764_v25 }
 0x186   :  { %v1775_v48 = vadd.f32 %v3680_v28, %v1765_v22  ;;  %v301_v33 = vpop.f32.mrf.mxu1  ;;  %v1778_v2 = vmax.f32 %v1774_v24, 0.0  ;;  %v1959_v24 = vld [vmem:[%s1958_s20] sm:$0x1]  ;;  %s2912_s20 = sld [smem:[#allocation3 + $0xe]] }
 0x187   :  { %1960 = vst.msk [vmem:[#allocation2 + $0x5] sm:$0x1] %vm1939_vm5, %v1959_v24 }
 0x188   :  { %v1779_v42 = vmax.f32 %v1775_v48, 0.0  ;;  %v456_v32 = vpop.f32.mrf.mxu1 }
 0x189   :  { %v457_v50 = vadd.f32 %v456_v32, %v299_v37  ;;  %v1955_v37 = vld [vmem:[%s1954_s1] sm:$0x1]  ;;  %v2003_v32 = vstv %s2002_s21 }
 0x18a   :  { %v458_v1 = vpop.f32.mrf.mxu1  ;;  %1826 = vmatprep.subr.mxu0 %v1779_v42  ;;  %1956 = vst.msk [vmem:[#allocation2 + $0x4] sm:$0x1] %vm1939_vm5, %v1955_v37 }
 0x18b   :  { %v459_v53 = vadd.f32 %v458_v1, %v301_v33  ;;  %1827 = vmatpush1.xpose.msra.mxu0 %v1778_v2  ;;  %v2004_v2 = vsel %vm2001_vm15, %v2003_v32, 0 }
 0x18c   :  { %v648_v57 = vpop.f32.mrf.mxu1  ;;  %2973 = vmatprep.subr.mxu0 %v3169_v5  ;;  %s1990_s25 = scalar_lea.vmem %s3994_s4, %s2912_s20 }
 0x18d   :  { %v655_v55 = vadd.f32 %v648_v57, %v457_v50  ;;  %v2007_v50 = vstv %s2915_s22 }
 0x18e   :  { %v650_v8 = vpop.f32.mrf.mxu1  ;;  %2897 = vmatmul.mubr.msk.f32.vlgmr.msra.gmra.mxu0 %vm1788_vm2, %v3177_v39  ;;  %v3864_v1 = vsel %vm2005_vm4, %v2007_v50, %v2004_v2 }
 0x18f   :  { %v656_v62 = vadd.f32 %v650_v8, %v459_v53  ;;  %2974 = vmatpush3.msra.mxu0 %v3770_v4  ;;  %2981 = vmatprep.mubr.msk.f32.mxu0 %vm3178_vm7, %v3169_v5  ;;  %vm2009_vm10 = vcmp.eq.s32.totalorder %v3864_v1, 1  ;;  %vm2010_vm1 = vcmp.eq.s32.totalorder %v3864_v1, 2  ;;  %v1967_v8 = vld [vmem:[%s1966_s28] sm:$0x1]  ;;  %vm2011_vm8 = vcmp.eq.s32.totalorder %v3864_v1, 3 }
 0x190   :  { %v836_v35 = vpop.f32.mrf.mxu1  ;;  %2975 = vmatprep.subr.mxu0 %v3169_v5  ;;  %1968 = vst.msk [vmem:[#allocation2 + $0x7] sm:$0x1] %vm1939_vm5, %v1967_v8  ;;  %vm2012_vm12 = vcmp.eq.s32.totalorder %v3864_v1, 4  ;;  %vm2013_vm3 = vcmp.eq.s32.totalorder %v3864_v1, 5  ;;  %vm2014_vm13 = vcmp.eq.s32.totalorder %v3864_v1, 6  ;;  %vm2015_vm14 = vcmp.eq.s32.totalorder %v3864_v1, 7 }
 0x191   :  { %v843_v18 = vadd.f32 %v836_v35, %v655_v55  ;;  %2976 = vmatpush3.msra.mxu0 %v3776_v34  ;;  %vm2016_vm9 = vcmp.eq.s32.totalorder %v3864_v1, 8 }
 0x192   :  { %v838_v23 = vpop.f32.mrf.mxu1  ;;  %2977 = vmatprep.subr.mxu0 %v3169_v5 }
 0x193   :  { %v844_v41 = vadd.f32 %v838_v23, %v656_v62  ;;  %2978 = vmatpush3.msra.mxu0 %v3785_v61  ;;  %v2176_v62 = vld [vmem:[#allocation2 + $0x4] sm:$0x3] }
 0x194   :  { %v995_v29 = vpop.f32.mrf.mxu1  ;;  %2979 = vmatprep.subr.mxu0 %v3169_v5 }
 0x195   :  { %v1002_v43 = vadd.f32 %v995_v29, %v843_v18  ;;  %2980 = vmatpush3.msra.mxu0 %v3792_v38 }
 0x196   :  { %v997_v26 = vpop.f32.mrf.mxu1  ;;  %2982 = vmatmul.mubr.f32.vlgmr.msra.gmra.mxu0 %v3169_v5  ;;  %2995 = vmatprep.subr.mxu0 %v3169_v5 }
 0x197   :  { %v1003_v12 = vadd.f32 %v997_v26, %v844_v41  ;;  %2996 = vmatpush3.msra.mxu0 %v3770_v4  ;;  %3003 = vmatprep.mubr.msk.f32.mxu0 %vm3178_vm7, %v3169_v5 }
 0x198   :  { %v1183_v31 = vpop.f32.mrf.mxu1  ;;  %2997 = vmatprep.subr.mxu0 %v3169_v5 }
 0x199   :  { %v1190_v44 = vadd.f32 %v1183_v31, %v1002_v43  ;;  %2998 = vmatpush3.msra.mxu0 %v3776_v34  ;;  %v1971_v43 = vld [vmem:[%s1970_s11] sm:$0x1] }
 0x19a   :  { %v1185_v36 = vpop.f32.mrf.mxu1  ;;  %2999 = vmatprep.subr.mxu0 %v3169_v5  ;;  %1972 = vst.msk [vmem:[#allocation2 + $0x8] sm:$0x1] %vm1939_vm5, %v1971_v43 }
 0x19b   :  { %v1191_v7 = vadd.f32 %v1185_v36, %v1003_v12  ;;  %3000 = vmatpush3.msra.mxu0 %v3785_v61  ;;  %v2253_v12 = vld [vmem:[#allocation2 + $0x6] sm:$0x3] }
 0x19c   :  { %v1379_v14 = vpop.f32.mrf.mxu1  ;;  %3001 = vmatprep.subr.mxu0 %v3169_v5 }
 0x19d   :  { %v1386_v46 = vadd.f32 %v1379_v14, %v1190_v44  ;;  %3002 = vmatpush3.msra.mxu0 %v3792_v38 }
 0x19e   :  { %v1381_v9 = vpop.f32.mrf.mxu1  ;;  %3017 = vmatprep.subr.mxu0 %v3169_v5 }
 0x19f   :  { %v1387_v47 = vadd.f32 %v1381_v9, %v1191_v7  ;;  %v1983_v9 = vld [vmem:[%s1982_s18] sm:$0x1]  ;;  %s3179_s18 = smov [#allocation8]  }
 0x1a0   :  { %v1567_v49 = vpop.f32.mrf.mxu1  ;;  %1984 = vst.msk [vmem:[#allocation2 + $0xb] sm:$0x1] %vm1939_vm5, %v1983_v9  ;;  %s2808_s19 = sshll.u32 %s3179_s18, 4  ;;  %s2809_s19 = int_to_ptr.vmem [resolvable:$true] %s2808_s19 }
 0x1a1   :  { %v1574_v51 = vadd.f32 %v1567_v49, %v1386_v46  ;;  %v1979_v46 = vld [vmem:[%s1978_s17] sm:$0x1]  ;;  %s3139_s20 = scalar_lea.vmem %s2809_s19, 32  ;;  %p3144_p11 = scmp.lt.s32.totalorder %s2809_s19, %s2809_s19 }
 0x1a2   :  { %v1569_v52 = vpop.f32.mrf.mxu1  ;;  %1980 = vst.msk [vmem:[#allocation2 + $0xa] sm:$0x1] %vm1939_vm5, %v1979_v46  ;;  %p3140_p10 = scmp.ne.s32.totalorder %s2809_s19, %s3139_s20  ;;  %p3145_p12 = scmp.lt.s32.totalorder %s3139_s20, %s3139_s20 }
 0x1a3   :  { %v1575_v54 = vadd.f32 %v1569_v52, %v1387_v47 }
 0x1a4   :  { %v1759_v56 = vpop.f32.mrf.mxu1  ;;  %p3146_p13 = por %p3145_p12, %p3144_p11 }
 0x1a5   :  { %v1766_v6 = vadd.f32 %v1759_v56, %v1574_v51 }
 0x1a6   :  { %v1761_v58 = vpop.f32.mrf.mxu1  ;;  %p3147_p0 = pnand %p3146_p13, %p3140_p10 }
 0x1a7   :  { %v1767_v59 = vadd.f32 %v1761_v58, %v1575_v54  ;;  %v1776_v19 = vadd.f32 %v3680_v28, %v1766_v6 }
 0x1a9   :  { %v1777_v60 = vadd.f32 %v3680_v28, %v1767_v59  ;;  %v1780_v16 = vmax.f32 %v1776_v19, 0.0  ;;  %v1943_v28 = vld [vmem:[%s1942_s30] sm:$0x1]  ;;  %s2908_s30 = sld [smem:[#allocation3 + $0xc]] }
 0x1aa   :  { %1944 = vst.msk [vmem:[#allocation2 + $0x1] sm:$0x1] %vm1939_vm5, %v1943_v28 }
 0x1ab   :  { %v1781_v3 = vmax.f32 %v1777_v60, 0.0  ;;  %v1995_v60 = vld [vmem:[%s1994_s29] sm:$0x1] }
 0x1ac   :  { %1996 = vst.msk [vmem:[#allocation2 + $0xe] sm:$0x1] %vm1939_vm5, %v1995_v60 }
 0x1ad   :  { %1896 = vmatprep.subr.mxu1 %v1781_v3 }
 0x1ae   :  { %1897 = vmatpush1.xpose.msra.mxu1 %v1780_v16 }
 0x1af   :  { %2984 = vmatprep.subr.mxu1 %v3169_v5  ;;  %s1974_s3 = scalar_lea.vmem %s3994_s4, %s2908_s30 }
 0x1b0   :  { %v1975_v26 = vld [vmem:[%s1974_s3] sm:$0x1] }
 0x1b1   :  { %2899 = vmatmul.mubr.msk.f32.vlgmr.msra.gmra.mxu1 %vm1790_vm0, %v3177_v39  ;;  %v1947_v39 = vld [vmem:[%s1946_s13] sm:$0x1]  ;;  %1976 = vst.msk [vmem:[#allocation2 + $0x9] sm:$0x1] %vm1939_vm5, %v1975_v26 }
 0x1b2   :  { %2985 = vmatpush3.msra.mxu1 %v3770_v4  ;;  %2992 = vmatprep.mubr.msk.f32.mxu1 %vm3178_vm7, %v3169_v5  ;;  %1948 = vst.msk [vmem:[#allocation2 + $0x2] sm:$0x1] %vm1939_vm5, %v1947_v39  ;;  %v2021_v13 = vld [vmem:[#allocation2] sm:$0x3] }
 0x1b3   :  { %2986 = vmatprep.subr.mxu1 %v3169_v5  ;;  %v2638_v39 = vld [vmem:[%s3997_s7] sm:$0xff] }
 0x1b4   :  { %2987 = vmatpush3.msra.mxu1 %v3776_v34 }
 0x1b5   :  { %2988 = vmatprep.subr.mxu1 %v3169_v5 }
 0x1b6   :  { %2989 = vmatpush3.msra.mxu1 %v3785_v61 }
 0x1b7   :  { %2990 = vmatprep.subr.mxu1 %v3169_v5 }
 0x1b8   :  { %2991 = vmatpush3.msra.mxu1 %v3792_v38  ;;  %v2330_v47 = vld [vmem:[#allocation2 + $0x8] sm:$0x3] }
 0x1b9   :  { %3006 = vmatprep.subr.mxu1 %v3169_v5  ;;  %v2099_v48 = vld [vmem:[#allocation2 + $0x2] sm:$0x3] }
 0x24e   :  { %v1862_v30 = vpop.f32.mrf.mxu0 }
 0x250   :  { %v1864_v27 = vpop.f32.mrf.mxu0 }
 0x251   :  { %v2642_v27 = vld [vmem:[%s3997_s7 + $0x20] sm:$0xff] }
 0x256   :  { %v2092_v15 = vpop.f32.mrf.mxu0 }
 0x257   :  { %v2096_v17 = vadd.f32 %v2092_v15, %v2021_v13  ;;  %v2641_v13 = vld [vmem:[%s3997_s7 + $0x18] sm:$0xff]  ;;  %v2640_v15 = vld [vmem:[%s3997_s7 + $0x10] sm:$0xff] }
 0x258   :  { %v2983_v20 = vpop.f32.mrf.mxu0 }
 0x259   :  { %3095 = vtanh.f32 %v2096_v17  ;;  %v2639_v17 = vld [vmem:[%s3997_s7 + $0x8] sm:$0xff] }
 0x25a   :  { %v2561_v20 = vld [vmem:[#allocation2 + $0xe] sm:$0x3] }
 0x266   :  { %v3096_v21 = vpop.eup %3095 }
 0x267   :  { %2993 = vmatmul.mubr.msk.f32.vlgmr.msra.gmra.mxu1 %vm2022_vm11, %v3096_v21  ;;  %v2098_v57 = vsel %vm2009_vm10, %v3096_v21, 0.0 }
 0x268   :  { %3007 = vmatpush3.msra.mxu1 %v3770_v4  ;;  %3014 = vmatprep.mubr.msk.f32.mxu1 %vm3178_vm7, %v3169_v5 }
 0x269   :  { %3008 = vmatprep.subr.mxu1 %v3169_v5 }
 0x26a   :  { %3009 = vmatpush3.msra.mxu1 %v3776_v34 }
 0x26b   :  { %3010 = vmatprep.subr.mxu1 %v3169_v5 }
 0x26c   :  { %3011 = vmatpush3.msra.mxu1 %v3785_v61 }
 0x26d   :  { %3012 = vmatprep.subr.mxu1 %v3169_v5 }
 0x26e   :  { %3013 = vmatpush3.msra.mxu1 %v3792_v38 }
 0x26f   :  { %3028 = vmatprep.subr.mxu1 %v3169_v5 }
 0x271   :  { %v1932_v25 = vpop.f32.mrf.mxu1 }
 0x272   :  { %v3852_v40 = vadd.f32 %v1932_v25, %v1862_v30 }
 0x273   :  { %v1934_v22 = vpop.f32.mrf.mxu1 }
 0x327   :  { %v2169_v33 = vpop.f32.mrf.mxu1 }
 0x328   :  { %v2173_v45 = vadd.f32 %v2169_v33, %v2099_v48 }
 0x329   :  { %v2994_v42 = vpop.f32.mrf.mxu1 }
 0x32a   :  { %3097 = vtanh.f32 %v2173_v45  ;;  %v2925_v45 = vld [vmem:[%s3997_s7 + $0x28] ss:$0 sm:$0xff] }
 0x337   :  { %v3098_v53 = vpop.eup %3097 }
 0x338   :  { %3004 = vmatmul.mubr.msk.f32.vlgmr.msra.gmra.mxu0 %vm2022_vm11, %v3098_v53  ;;  %v2175_v55 = vsel %vm2010_vm1, %v3098_v53, %v2098_v57 }
 0x339   :  { %3018 = vmatpush3.msra.mxu0 %v3770_v4  ;;  %3025 = vmatprep.mubr.msk.f32.mxu0 %vm3178_vm7, %v3169_v5 }
 0x33a   :  { %3019 = vmatprep.subr.mxu0 %v3169_v5 }
 0x33b   :  { %3020 = vmatpush3.msra.mxu0 %v3776_v34 }
 0x33c   :  { %3021 = vmatprep.subr.mxu0 %v3169_v5 }
 0x33d   :  { %3022 = vmatpush3.msra.mxu0 %v3785_v61 }
 0x33e   :  { %3023 = vmatprep.subr.mxu0 %v3169_v5 }
 0x33f   :  { %3024 = vmatpush3.msra.mxu0 %v3792_v38 }
 0x340   :  { %3039 = vmatprep.subr.mxu0 %v3169_v5 }
 0x3f8   :  { %v2246_v35 = vpop.f32.mrf.mxu0 }
 0x3f9   :  { %v2250_v18 = vadd.f32 %v2246_v35, %v2176_v62 }
 0x3fa   :  { %v3005_v23 = vpop.f32.mrf.mxu0 }
 0x3fb   :  { %3099 = vtanh.f32 %v2250_v18 }
 0x408   :  { %v3100_v41 = vpop.eup %3099 }
 0x409   :  { %3015 = vmatmul.mubr.msk.f32.vlgmr.msra.gmra.mxu1 %vm2022_vm11, %v3100_v41  ;;  %v2252_v29 = vsel %vm2011_vm8, %v3100_v41, %v2175_v55 }
 0x40a   :  { %3029 = vmatpush3.msra.mxu1 %v3770_v4  ;;  %3036 = vmatprep.mubr.msk.f32.mxu1 %vm3178_vm7, %v3169_v5 }
 0x40b   :  { %3030 = vmatprep.subr.mxu1 %v3169_v5 }
 0x40c   :  { %3031 = vmatpush3.msra.mxu1 %v3776_v34 }
 0x40d   :  { %3032 = vmatprep.subr.mxu1 %v3169_v5 }
 0x40e   :  { %3033 = vmatpush3.msra.mxu1 %v3785_v61 }
 0x40f   :  { %3034 = vmatprep.subr.mxu1 %v3169_v5 }
 0x410   :  { %3035 = vmatpush3.msra.mxu1 %v3792_v38 }
 0x411   :  { %3050 = vmatprep.subr.mxu1 %v3169_v5 }
 0x4c9   :  { %v2323_v31 = vpop.f32.mrf.mxu1 }
 0x4ca   :  { %v2327_v44 = vadd.f32 %v2323_v31, %v2253_v12 }
 0x4cb   :  { %v3016_v36 = vpop.f32.mrf.mxu1 }
 0x4cc   :  { %3101 = vtanh.f32 %v2327_v44 }
 0x4d9   :  { %v3102_v7 = vpop.eup %3101 }
 0x4da   :  { %3026 = vmatmul.mubr.msk.f32.vlgmr.msra.gmra.mxu0 %vm2022_vm11, %v3102_v7  ;;  %v2329_v14 = vsel %vm2012_vm12, %v3102_v7, %v2252_v29 }
 0x4db   :  { %3040 = vmatpush3.msra.mxu0 %v3770_v4  ;;  %3047 = vmatprep.mubr.msk.f32.mxu0 %vm3178_vm7, %v3169_v5 }
 0x4dc   :  { %3041 = vmatprep.subr.mxu0 %v3169_v5 }
 0x4dd   :  { %3042 = vmatpush3.msra.mxu0 %v3776_v34 }
 0x4de   :  { %3043 = vmatprep.subr.mxu0 %v3169_v5 }
 0x4df   :  { %3044 = vmatpush3.msra.mxu0 %v3785_v61 }
 0x4e0   :  { %3045 = vmatprep.subr.mxu0 %v3169_v5 }
 0x4e1   :  { %3046 = vmatpush3.msra.mxu0 %v3792_v38 }
 0x4e2   :  { %3061 = vmatprep.subr.mxu0 %v3169_v5 }
 0x59a   :  { %v2400_v49 = vpop.f32.mrf.mxu0 }
 0x59b   :  { %v2404_v51 = vadd.f32 %v2400_v49, %v2330_v47 }
 0x59c   :  { %v3027_v52 = vpop.f32.mrf.mxu0 }
 0x59d   :  { %3103 = vtanh.f32 %v2404_v51 }
 0x5aa   :  { %v3104_v54 = vpop.eup %3103 }
 0x5ab   :  { %3037 = vmatmul.mubr.msk.f32.vlgmr.msra.gmra.mxu1 %vm2022_vm11, %v3104_v54  ;;  %v2406_v56 = vsel %vm2013_vm3, %v3104_v54, %v2329_v14 }
 0x5ac   :  { %3051 = vmatpush3.msra.mxu1 %v3770_v4  ;;  %3058 = vmatprep.mubr.msk.f32.mxu1 %vm3178_vm7, %v3169_v5  ;;  %v1987_v4 = vld [vmem:[%s1986_s23] sm:$0x1] }
 0x5ad   :  { %3052 = vmatprep.subr.mxu1 %v3169_v5  ;;  %1988 = vst.msk [vmem:[#allocation2 + $0xc] sm:$0x1] %vm1939_vm5, %v1987_v4 }
 0x5ae   :  { %3053 = vmatpush3.msra.mxu1 %v3776_v34  ;;  %v1991_v34 = vld [vmem:[%s1990_s25] sm:$0x1] }
 0x5af   :  { %3054 = vmatprep.subr.mxu1 %v3169_v5  ;;  %1992 = vst.msk [vmem:[#allocation2 + $0xd] sm:$0x1] %vm1939_vm5, %v1991_v34 }
 0x5b0   :  { %3055 = vmatpush3.msra.mxu1 %v3785_v61  ;;  %v2407_v61 = vld [vmem:[#allocation2 + $0xa] sm:$0x3] }
 0x5b1   :  { %3056 = vmatprep.subr.mxu1 %v3169_v5 }
 0x5b2   :  { %3057 = vmatpush3.msra.mxu1 %v3792_v38 }
 0x5b3   :  { %3072 = vmatprep.subr.mxu1 %v3169_v5 }
 0x5b6   :  { %v2484_v3 = vld [vmem:[#allocation2 + $0xc] sm:$0x3] }
 0x66b   :  { %v2477_v38 = vpop.f32.mrf.mxu1 }
 0x66c   :  { %v2481_v6 = vadd.f32 %v2477_v38, %v2407_v61 }
 0x66d   :  { %v3038_v58 = vpop.f32.mrf.mxu1 }
 0x66e   :  { %3105 = vtanh.f32 %v2481_v6 }
 0x67b   :  { %v3106_v59 = vpop.eup %3105 }
 0x67c   :  { %3048 = vmatmul.mubr.msk.f32.vlgmr.msra.gmra.mxu0 %vm2022_vm11, %v3106_v59  ;;  %v2483_v19 = vsel %vm2014_vm13, %v3106_v59, %v2406_v56 }
 0x67d   :  { %3069 = vmatprep.mubr.msk.f32.mxu0 %vm3178_vm7, %v3169_v5  ;;  %3062 = vmatpush3.msra.mxu0 %v2642_v27 }
 0x67e   :  { %3063 = vmatprep.subr.mxu0 %v3169_v5 }
 0x67f   :  { %3064 = vmatpush3.msra.mxu0 %v2641_v13 }
 0x680   :  { %3065 = vmatprep.subr.mxu0 %v3169_v5 }
 0x681   :  { %3066 = vmatpush3.msra.mxu0 %v2640_v15 }
 0x682   :  { %3067 = vmatprep.subr.mxu0 %v3169_v5 }
 0x683   :  { %3068 = vmatpush3.msra.mxu0 %v2639_v17 }
 0x73c   :  { %v2554_v16 = vpop.f32.mrf.mxu0 }
 0x73d   :  { %v2558_v0 = vadd.f32 %v2554_v16, %v2484_v3 }
 0x73e   :  { %v3049_v28 = vpop.f32.mrf.mxu0 }
 0x73f   :  { %3107 = vtanh.f32 %v2558_v0 }
 0x74c   :  { %v3108_v10 = vpop.eup %3107 }
 0x74d   :  { %3059 = vmatmul.mubr.msk.f32.vlgmr.msra.gmra.mxu1 %vm2022_vm11, %v3108_v10  ;;  %v2560_v30 = vsel %vm2015_vm14, %v3108_v10, %v2483_v19 }
 0x74e   :  { %3073 = vmatpush3.msra.mxu1 %v2638_v39  ;;  %3074 = vmatprep.mubr.msk.f32.mxu1 %vm3178_vm7, %v3169_v5 }
 0x751   :  { %3075 = vmatmul.mubr.msk.f32.vlgmr.msra.gmra.mxu1 %vm2716_vm6, %v3852_v40 }
 0x80d   :  { %v2631_v21 = vpop.f32.mrf.mxu1 }
 0x80e   :  { %v2635_v25 = vadd.f32 %v2631_v21, %v2561_v20 }
 0x80f   :  { %v3060_v40 = vpop.f32.mrf.mxu1 }
 0x810   :  { %3109 = vtanh.f32 %v2635_v25 }
 0x811   :  { %v2786_v22 = vpop.f32.mrf.mxu1 }
 0x813   :  { %v3076_v37 = vpop.f32.mrf.mxu1 }
 0x81d   :  { %v3110_v24 = vpop.eup %3109 }
 0x81e   :  { %v2637_v48 = vsel %vm2016_vm9, %v3110_v24, %v2560_v30 }
 0x81f   :  { %3070 = vmatmul.mubr.msk.f32.vlgmr.msra.gmra.mxu0 %vm2022_vm11, %v2637_v48 }
 0x8df   :  { %v2712_v33 = vpop.f32.mrf.mxu0 }
 0x8e0   :  { %v2787_v5 = vadd.f32 %v2786_v22, %v2712_v33 }
 0x8e1   :  { %v3071_v42 = vpop.f32.mrf.mxu0 }
 0x8e2   :  { %v2795_v32 = vadd.f32 %v2925_v45, %v2787_v5 }
 0x8e4   :  { %v2796_v2 = vsub.f32 0.0, %v2795_v32 }
 0x8e6   :  { %v2797_v50 = vmul.f32 1.442695, %v2796_v2 }
 0x8e8   :  { %3111 = vpow2.f32 %v2797_v50 }
 0x8f5   :  { %v3112_v53 = vpop.eup %3111 }
 0x8f6   :  { %v2799_v57 = vadd.f32 1.0, %v3112_v53 }
 0x8f8   :  { %3113 = vrcp.f32 %v2799_v57 }
 0x905   :  { %v3114_v1 = vpop.eup %3113 }
 0x906   :  { %2801 = vst [vmem:[#allocation8] sm:$0x3] %v3114_v1 }
 0x907   :  { %3150 = shalt.err (!%p3147_p0)
}
 0x908   :  { %2811 = dma.vmem_to_hbm [thread:$0]  %s2809_s19, 32, %s3998_s8, [#allocation4]  }
 0x909   :  { %3163 = dma.done.wait [#allocation4], 32  }
 0x90a   :  { %3164 = vsyncadd [#allocation4], 4294967264 }
 0x90b   :  { %2815 = vsyncpa [#allocation4], 1 }
 0x90c   :  { %2816 = vsyncpa [#allocation5], 1 }
 0x90d   :  { %2817 = vsyncpa [#allocation7], 1 }

</bundles_post_ra>
